<compile_context>
chip_gen: v6e
topology: v6e:2x2x1
jax: 0.10.0
libtpu: 0.0.40
codegen_flags: <defaults>
</compile_context>

<pallas_src>
import functools

import jax
import jax.numpy as jnp
from jax import lax
from jax.experimental import pallas as pl
from jax.experimental.pallas import tpu as pltpu

# ---------------------------------------------------------------------------
# model hyper-parameters (args)
# ---------------------------------------------------------------------------
EMBED_SIZE = 32         # args.embed_size
LSTM_HIDDEN = 32        # args.lstm_hidden_size
ATTENTION_LAYERS = 2    # args.attention_layers
VOCAB = 50
B = 2                   # batch
LQ = 8                  # question length
LA = 12                 # answer length
EPS = 1e-8              # torch F.cosine_similarity default eps


# ---------------------------------------------------------------------------
# in-kernel helper: additive attention, batch-major & lane-dense
# ---------------------------------------------------------------------------
def _attend(states, proj_s, query, w_m, v3):
    """states / proj_s: [B, L, H], query: [B, H], v3: [B, 1, H] -> [B, H]."""
    proj_q = jnp.dot(query, w_m, preferred_element_type=jnp.float32)      # [B, H]
    u = jnp.tanh(proj_s + proj_q[:, None, :])                             # [B, L, H]
    # lane-dense scores [B, L]: batched MXU contraction over H
    scores = jnp.einsum('bqh,blh->bql', v3, u,
                        preferred_element_type=jnp.float32)[:, 0, :]      # [B, L]
    scores = scores - jnp.max(scores, axis=-1, keepdims=True)
    w = jnp.exp(scores)
    w = w / jnp.sum(w, axis=-1, keepdims=True)                            # softmax over lanes
    o = jnp.einsum('bql,blh->bqh', w[:, None, :], states,
                   preferred_element_type=jnp.float32)[:, 0, :]           # [B, H]
    return o


# ---------------------------------------------------------------------------
# Pallas kernel: embedding lookup + fused LSTM + multi-hop attention + cosine
# ---------------------------------------------------------------------------
def multihop_kernel(ids_ref, embed_ref, lstmw_ref, attw_ref, out_ref, hs_ref,
                    *, bsz, lq, la):
    vocab, embed_dim = embed_ref.shape
    hidden = attw_ref.shape[1]
    nb = 2 * bsz
    lmax = ids_ref.shape[0] // nb

    # ---- packed weight slabs: static sub-views (2 DMAs instead of 10) -----
    w_ih = lstmw_ref[0:embed_dim, :]                                   # [E, 4H]
    w_hh = lstmw_ref[embed_dim:embed_dim + hidden, :]                  # [H, 4H]
    b = lstmw_ref[embed_dim + hidden:embed_dim + hidden + 1, :]        # [1, 4H]
    wqh = attw_ref[0 * hidden:1 * hidden, :]
    wqm = attw_ref[1 * hidden:2 * hidden, :]
    wah = attw_ref[2 * hidden:3 * hidden, :]
    wam = attw_ref[3 * hidden:4 * hidden, :]
    vq = attw_ref[4 * hidden:4 * hidden + 1, :]                        # [1, H]
    va = attw_ref[4 * hidden + 1:4 * hidden + 2, :]                    # [1, H]

    # ---- in-kernel embedding lookup: exact one-hot @ table (MXU) ----------
    ids = ids_ref[...]                                     # [Lmax*2B, 1] int32, -1 = pad
    vocab_iota = lax.broadcasted_iota(jnp.int32, (nb * lmax, vocab), 1)
    onehot = (ids == vocab_iota).astype(jnp.float32)       # pad rows -> all zeros
    x = jnp.dot(onehot, embed_ref[...],
                preferred_element_type=jnp.float32)        # [Lmax*2B, E]

    # input projection + bias hoisted out of the recurrence (one big matmul)
    xp = jnp.dot(x, w_ih, preferred_element_type=jnp.float32) + b      # [Lmax*2B, 4H]

    # ---- fused LSTM recurrence (question & answer stacked along rows) -----
    h = jnp.zeros((nb, hidden), jnp.float32)
    c = jnp.zeros((nb, hidden), jnp.float32)
    for t in range(lmax):                                  # static unroll (small fixed Lmax)
        gates = xp[t * nb:(t + 1) * nb, :] + jnp.dot(
            h, w_hh, preferred_element_type=jnp.float32)               # [2B, 4H]
        sg = jax.nn.sigmoid(gates)                         # ONE EUP pass on packed gates
        tg = jnp.tanh(gates)                               # ONE EUP pass on packed gates
        i_g = sg[:, 0 * hidden:1 * hidden]
        f_g = sg[:, 1 * hidden:2 * hidden]
        g_g = tg[:, 2 * hidden:3 * hidden]
        o_g = sg[:, 3 * hidden:4 * hidden]
        c = f_g * c + i_g * g_g
        h = o_g * jnp.tanh(c)
        hs_ref[:, t, :] = h                                # batch-major scratch [2B, Lmax, H]

    hs = hs_ref[...]                                       # [2B, Lmax, H]
    # Padded question timesteps are simply never read (causal, write-only waste).
    hq = hs[:bsz, :lq, :]                                  # [B, LQ, H]  (offset-0 slices)
    ha = hs[bsz:, :la, :]                                  # [B, LA, H]  (outer-dim slice)

    # m_q = mean(lstm_list_question, dim=-2)
    m_q = jnp.mean(hq, axis=1)                             # [B, H]

    # hop-invariant state projections + score-vector broadcasts (hoisted)
    proj_sq = jnp.dot(hq.reshape(bsz * lq, hidden), wqh,
                      preferred_element_type=jnp.float32).reshape(bsz, lq, hidden)
    proj_sa = jnp.dot(ha.reshape(bsz * la, hidden), wah,
                      preferred_element_type=jnp.float32).reshape(bsz, la, hidden)
    vq3 = jnp.broadcast_to(vq.reshape(1, 1, hidden), (bsz, 1, hidden))
    va3 = jnp.broadcast_to(va.reshape(1, 1, hidden), (bsz, 1, hidden))

    # ---- multi-hop attention + cosine scoring ------------------------------
    score = jnp.zeros((bsz, 1), jnp.float32)
    eps2 = EPS * EPS
    for _ in range(ATTENTION_LAYERS):
        # QuestionAttention: attend over question states with memory m_q
        o_q = _attend(hq, proj_sq, m_q, wqm, vq3)                        # [B, H]
        # TODO(synk): exact QuestionAttention memory update unknown; use m_q + o_q.
        m_q = m_q + o_q
        # SequentialAttention: attend over answer states with query o_q
        o_a = _attend(ha, proj_sa, o_q, wam, va3)                        # [B, H]
        # F.cosine_similarity(o_q, o_a) along feature dim (rsqrt -> EUP)
        num = jnp.sum(o_q * o_a, axis=-1, keepdims=True)
        ssq_q = jnp.sum(o_q * o_q, axis=-1, keepdims=True)
        ssq_a = jnp.sum(o_a * o_a, axis=-1, keepdims=True)
        score = score + num * (lax.rsqrt(jnp.maximum(ssq_q, eps2))
                               * lax.rsqrt(jnp.maximum(ssq_a, eps2)))

    out_ref[...] = score * (1.0 / ATTENTION_LAYERS)        # [B, 1]


# ---------------------------------------------------------------------------
# wrapper
# ---------------------------------------------------------------------------
@jax.jit
def multihop_attention(question_ids, answer_ids, params):
    bsz, lq = question_ids.shape
    la = answer_ids.shape[1]
    lmax = max(lq, la)
    hidden = params['att_w'].shape[1]

    # Only int32-id glue remains outside the kernel (fused under jit): pad to
    # Lmax with -1 (matches nothing in the one-hot -> zero embedding), stack
    # question over answer, time-major flatten so recurrence step t reads one
    # contiguous row block of xp.
    q_p = jnp.pad(question_ids.astype(jnp.int32), ((0, 0), (0, lmax - lq)),
                  constant_values=-1)
    a_p = jnp.pad(answer_ids.astype(jnp.int32), ((0, 0), (0, lmax - la)),
                  constant_values=-1)
    ids = jnp.concatenate([q_p, a_p], axis=0).T.reshape(2 * bsz * lmax, 1)

    kernel = functools.partial(multihop_kernel, bsz=bsz, lq=lq, la=la)
    vmem = pl.BlockSpec(memory_space=pltpu.MemorySpace.VMEM)
    out = pl.pallas_call(
        kernel,
        out_shape=jax.ShapeDtypeStruct((bsz, 1), jnp.float32),
        in_specs=[vmem] * 4,
        out_specs=vmem,
        scratch_shapes=[pltpu.VMEM((2 * bsz, lmax, hidden), jnp.float32)],
    )(ids, params['embed'], params['lstm_w'], params['att_w'])
    return out[:, 0]                                       # [B]


def init_params(key):
    ks = jax.random.split(key, 10)
    H, E = LSTM_HIDDEN, EMBED_SIZE
    s = 0.1
    embed = jax.random.normal(ks[0], (VOCAB, E), jnp.float32) * s
    w_ih = jax.random.normal(ks[1], (E, 4 * H), jnp.float32) * s
    w_hh = jax.random.normal(ks[2], (H, 4 * H), jnp.float32) * s
    b = jnp.zeros((1, 4 * H), jnp.float32)
    wqh = jax.random.normal(ks[3], (H, H), jnp.float32) * s
    wqm = jax.random.normal(ks[4], (H, H), jnp.float32) * s
    vq = jax.random.normal(ks[5], (1, H), jnp.float32) * s
    wah = jax.random.normal(ks[6], (H, H), jnp.float32) * s
    wam = jax.random.normal(ks[7], (H, H), jnp.float32) * s
    va = jax.random.normal(ks[8], (1, H), jnp.float32) * s
    # Pack once at init (not per call): 2 weight DMAs instead of 10; pad the
    # embed table's vocab dim to a multiple of 8 with zero rows (never indexed).
    vocab_pad = (-VOCAB) % 8
    return {
        'embed': jnp.pad(embed, ((0, vocab_pad), (0, 0))),                  # [56, E]
        'lstm_w': jnp.concatenate([w_ih, w_hh, b], axis=0),                 # [E+H+1, 4H]
        'att_w': jnp.concatenate([wqh, wqm, wah, wam, vq, va], axis=0),     # [4H+2, H]
    }


if __name__ == "__main__":
    key = jax.random.PRNGKey(0)
    pkey, qkey, akey = jax.random.split(key, 3)
    params = init_params(pkey)

    question = jax.random.randint(qkey, (B, LQ), 0, VOCAB, dtype=jnp.int32)
    answer = jax.random.randint(akey, (B, LA), 0, VOCAB, dtype=jnp.int32)

    score = multihop_attention(question, answer, params)
    jax.block_until_ready(score)
    assert score.shape == (B,)
    assert bool(jnp.all(jnp.isfinite(score)))
    print("KERNEL_OK")
</pallas_src>

<mosaic_0001>
module attributes {stable_mosaic.version = 11 : i64} {
  func.func @multihop_kernel(%arg0: memref<48x1xi32, #tpu.memory_space<vmem>>, %arg1: memref<56x32xf32, #tpu.memory_space<vmem>>, %arg2: memref<65x128xf32, #tpu.memory_space<vmem>>, %arg3: memref<130x32xf32, #tpu.memory_space<vmem>>, %arg4: memref<2x1xf32, #tpu.memory_space<vmem>>, %arg5: memref<4x12x32xf32, #tpu.memory_space<vmem>>) attributes {dimension_semantics = [], scalar_prefetch = 0 : i64, scratch_operands = 1 : i64, tpu.core_type = #tpu.core_type<tc>} {
    %c0 = arith.constant 0 : index
    %c0_0 = arith.constant 0 : index
    %0 = vector.load %arg2[%c0, %c0_0] : memref<65x128xf32, #tpu.memory_space<vmem>>, vector<32x128xf32>
    %c32 = arith.constant 32 : index
    %c0_1 = arith.constant 0 : index
    %1 = vector.load %arg2[%c32, %c0_1] : memref<65x128xf32, #tpu.memory_space<vmem>>, vector<32x128xf32>
    %c64 = arith.constant 64 : index
    %c0_2 = arith.constant 0 : index
    %2 = vector.load %arg2[%c64, %c0_2] : memref<65x128xf32, #tpu.memory_space<vmem>>, vector<1x128xf32>
    %c0_3 = arith.constant 0 : index
    %c0_4 = arith.constant 0 : index
    %3 = vector.load %arg3[%c0_3, %c0_4] : memref<130x32xf32, #tpu.memory_space<vmem>>, vector<32x32xf32>
    %c32_5 = arith.constant 32 : index
    %c0_6 = arith.constant 0 : index
    %4 = vector.load %arg3[%c32_5, %c0_6] : memref<130x32xf32, #tpu.memory_space<vmem>>, vector<32x32xf32>
    %c64_7 = arith.constant 64 : index
    %c0_8 = arith.constant 0 : index
    %5 = vector.load %arg3[%c64_7, %c0_8] : memref<130x32xf32, #tpu.memory_space<vmem>>, vector<32x32xf32>
    %c96 = arith.constant 96 : index
    %c0_9 = arith.constant 0 : index
    %6 = vector.load %arg3[%c96, %c0_9] : memref<130x32xf32, #tpu.memory_space<vmem>>, vector<32x32xf32>
    %c128 = arith.constant 128 : index
    %c0_10 = arith.constant 0 : index
    %7 = vector.load %arg3[%c128, %c0_10] : memref<130x32xf32, #tpu.memory_space<vmem>>, vector<1x32xf32>
    %c129 = arith.constant 129 : index
    %c0_11 = arith.constant 0 : index
    %8 = vector.load %arg3[%c129, %c0_11] : memref<130x32xf32, #tpu.memory_space<vmem>>, vector<1x32xf32>
    %c0_12 = arith.constant 0 : index
    %c0_13 = arith.constant 0 : index
    %9 = vector.load %arg0[%c0_12, %c0_13] : memref<48x1xi32, #tpu.memory_space<vmem>>, vector<48x1xi32>
    %10 = tpu.iota {dimensions = array<i32: 1>} : vector<48x56xi32>
    %11 = vector.broadcast %9 : vector<48x1xi32> to vector<48x56xi32>
    %12 = arith.cmpi eq, %11, %10 : vector<48x56xi32>
    %13 = arith.extui %12 : vector<48x56xi1> to vector<48x56xi32>
    %14 = arith.sitofp %13 : vector<48x56xi32> to vector<48x56xf32>
    %c0_14 = arith.constant 0 : index
    %c0_15 = arith.constant 0 : index
    %15 = vector.load %arg1[%c0_14, %c0_15] : memref<56x32xf32, #tpu.memory_space<vmem>>, vector<56x32xf32>
    %cst = arith.constant dense<0.000000e+00> : vector<48x32xf32>
    %16 = tpu.matmul %14, %15, %cst {dimension_numbers = #tpu.dot_dimension_numbers<[1], [0], [0], [1], [0, 0, 1, 1], [], []>} : vector<48x56xf32>, vector<56x32xf32>, vector<48x32xf32> -> vector<48x32xf32>
    %cst_16 = arith.constant dense<0.000000e+00> : vector<48x128xf32>
    %17 = tpu.matmul %16, %0, %cst_16 {dimension_numbers = #tpu.dot_dimension_numbers<[1], [0], [0], [1], [0, 0, 1, 1], [], []>} : vector<48x32xf32>, vector<32x128xf32>, vector<48x128xf32> -> vector<48x128xf32>
    %18 = vector.broadcast %2 : vector<1x128xf32> to vector<48x128xf32>
    %19 = arith.addf %17, %18 : vector<48x128xf32>
    %cst_17 = arith.constant 0.000000e+00 : f32
    %20 = vector.broadcast %cst_17 : f32 to vector<4x32xf32>
    %cst_18 = arith.constant 0.000000e+00 : f32
    %21 = vector.broadcast %cst_18 : f32 to vector<4x32xf32>
    %22 = vector.extract_strided_slice %19 {offsets = [0, 0], sizes = [4, 128], strides = [1, 1]} : vector<48x128xf32> to vector<4x128xf32>
    %cst_19 = arith.constant dense<0.000000e+00> : vector<4x128xf32>
    %23 = tpu.matmul %20, %1, %cst_19 {dimension_numbers = #tpu.dot_dimension_numbers<[1], [0], [0], [1], [0, 0, 1, 1], [], []>} : vector<4x32xf32>, vector<32x128xf32>, vector<4x128xf32> -> vector<4x128xf32>
    %24 = arith.addf %22, %23 : vector<4x128xf32>
    %25 = arith.negf %24 : vector<4x128xf32>
    %26 = math.exp %25 : vector<4x128xf32>
    %cst_20 = arith.constant 1.000000e+00 : f32
    %27 = vector.broadcast %cst_20 : f32 to vector<4x128xf32>
    %28 = arith.addf %27, %26 : vector<4x128xf32>
    %29 = arith.divf %27, %28 : vector<4x128xf32>
    %30 = math.tanh %24 : vector<4x128xf32>
    %31 = vector.extract_strided_slice %29 {offsets = [0, 0], sizes = [4, 32], strides = [1, 1]} : vector<4x128xf32> to vector<4x32xf32>
    %32 = vector.extract_strided_slice %29 {offsets = [0, 32], sizes = [4, 32], strides = [1, 1]} : vector<4x128xf32> to vector<4x32xf32>
    %33 = vector.extract_strided_slice %30 {offsets = [0, 64], sizes = [4, 32], strides = [1, 1]} : vector<4x128xf32> to vector<4x32xf32>
    %34 = vector.extract_strided_slice %29 {offsets = [0, 96], sizes = [4, 32], strides = [1, 1]} : vector<4x128xf32> to vector<4x32xf32>
    %35 = arith.mulf %32, %21 : vector<4x32xf32>
    %36 = arith.mulf %31, %33 : vector<4x32xf32>
    %37 = arith.addf %35, %36 : vector<4x32xf32>
    %38 = math.tanh %37 : vector<4x32xf32>
    %39 = arith.mulf %34, %38 : vector<4x32xf32>
    %c0_21 = arith.constant 0 : index
    %c0_22 = arith.constant 0 : index
    %c0_23 = arith.constant 0 : index
    %40 = vector.load %arg5[%c0_21, %c0_22, %c0_23] : memref<4x12x32xf32, #tpu.memory_space<vmem>>, vector<4x1x32xf32>
    %41 = vector.shape_cast %40 : vector<4x1x32xf32> to vector<4x32xf32>
    %42 = vector.shape_cast %39 : vector<4x32xf32> to vector<4x1x32xf32>
    tpu.vector_store %arg5[%c0_21, %c0_22, %c0_23], %42 {strides = array<i32>} : memref<4x12x32xf32, #tpu.memory_space<vmem>>, vector<4x1x32xf32>,
    %43 = vector.extract_strided_slice %19 {offsets = [4, 0], sizes = [4, 128], strides = [1, 1]} : vector<48x128xf32> to vector<4x128xf32>
    %cst_24 = arith.constant dense<0.000000e+00> : vector<4x128xf32>
    %44 = tpu.matmul %39, %1, %cst_24 {dimension_numbers = #tpu.dot_dimension_numbers<[1], [0], [0], [1], [0, 0, 1, 1], [], []>} : vector<4x32xf32>, vector<32x128xf32>, vector<4x128xf32> -> vector<4x128xf32>
    %45 = arith.addf %43, %44 : vector<4x128xf32>
    %46 = arith.negf %45 : vector<4x128xf32>
    %47 = math.exp %46 : vector<4x128xf32>
    %cst_25 = arith.constant 1.000000e+00 : f32
    %48 = vector.broadcast %cst_25 : f32 to vector<4x128xf32>
    %49 = arith.addf %48, %47 : vector<4x128xf32>
    %50 = arith.divf %48, %49 : vector<4x128xf32>
    %51 = math.tanh %45 : vector<4x128xf32>
    %52 = vector.extract_strided_slice %50 {offsets = [0, 0], sizes = [4, 32], strides = [1, 1]} : vector<4x128xf32> to vector<4x32xf32>
    %53 = vector.extract_strided_slice %50 {offsets = [0, 32], sizes = [4, 32], strides = [1, 1]} : vector<4x128xf32> to vector<4x32xf32>
    %54 = vector.extract_strided_slice %51 {offsets = [0, 64], sizes = [4, 32], strides = [1, 1]} : vector<4x128xf32> to vector<4x32xf32>
    %55 = vector.extract_strided_slice %50 {offsets = [0, 96], sizes = [4, 32], strides = [1, 1]} : vector<4x128xf32> to vector<4x32xf32>
    %56 = arith.mulf %53, %37 : vector<4x32xf32>
    %57 = arith.mulf %52, %54 : vector<4x32xf32>
    %58 = arith.addf %56, %57 : vector<4x32xf32>
    %59 = math.tanh %58 : vector<4x32xf32>
    %60 = arith.mulf %55, %59 : vector<4x32xf32>
    %c0_26 = arith.constant 0 : index
    %c1 = arith.constant 1 : index
    %c0_27 = arith.constant 0 : index
    %61 = vector.load %arg5[%c0_26, %c1, %c0_27] : memref<4x12x32xf32, #tpu.memory_space<vmem>>, vector<4x1x32xf32>
    %62 = vector.shape_cast %61 : vector<4x1x32xf32> to vector<4x32xf32>
    %63 = vector.shape_cast %60 : vector<4x32xf32> to vector<4x1x32xf32>
    tpu.vector_store %arg5[%c0_26, %c1, %c0_27], %63 {strides = array<i32>} : memref<4x12x32xf32, #tpu.memory_space<vmem>>, vector<4x1x32xf32>,
    %64 = vector.extract_strided_slice %19 {offsets = [8, 0], sizes = [4, 128], strides = [1, 1]} : vector<48x128xf32> to vector<4x128xf32>
    %cst_28 = arith.constant dense<0.000000e+00> : vector<4x128xf32>
    %65 = tpu.matmul %60, %1, %cst_28 {dimension_numbers = #tpu.dot_dimension_numbers<[1], [0], [0], [1], [0, 0, 1, 1], [], []>} : vector<4x32xf32>, vector<32x128xf32>, vector<4x128xf32> -> vector<4x128xf32>
    %66 = arith.addf %64, %65 : vector<4x128xf32>
    %67 = arith.negf %66 : vector<4x128xf32>
    %68 = math.exp %67 : vector<4x128xf32>
    %cst_29 = arith.constant 1.000000e+00 : f32
    %69 = vector.broadcast %cst_29 : f32 to vector<4x128xf32>
    %70 = arith.addf %69, %68 : vector<4x128xf32>
    %71 = arith.divf %69, %70 : vector<4x128xf32>
    %72 = math.tanh %66 : vector<4x128xf32>
    %73 = vector.extract_strided_slice %71 {offsets = [0, 0], sizes = [4, 32], strides = [1, 1]} : vector<4x128xf32> to vector<4x32xf32>
    %74 = vector.extract_strided_slice %71 {offsets = [0, 32], sizes = [4, 32], strides = [1, 1]} : vector<4x128xf32> to vector<4x32xf32>
    %75 = vector.extract_strided_slice %72 {offsets = [0, 64], sizes = [4, 32], strides = [1, 1]} : vector<4x128xf32> to vector<4x32xf32>
    %76 = vector.extract_strided_slice %71 {offsets = [0, 96], sizes = [4, 32], strides = [1, 1]} : vector<4x128xf32> to vector<4x32xf32>
    %77 = arith.mulf %74, %58 : vector<4x32xf32>
    %78 = arith.mulf %73, %75 : vector<4x32xf32>
    %79 = arith.addf %77, %78 : vector<4x32xf32>
    %80 = math.tanh %79 : vector<4x32xf32>
    %81 = arith.mulf %76, %80 : vector<4x32xf32>
    %c0_30 = arith.constant 0 : index
    %c2 = arith.constant 2 : index
    %c0_31 = arith.constant 0 : index
    %82 = vector.load %arg5[%c0_30, %c2, %c0_31] : memref<4x12x32xf32, #tpu.memory_space<vmem>>, vector<4x1x32xf32>
    %83 = vector.shape_cast %82 : vector<4x1x32xf32> to vector<4x32xf32>
    %84 = vector.shape_cast %81 : vector<4x32xf32> to vector<4x1x32xf32>
    tpu.vector_store %arg5[%c0_30, %c2, %c0_31], %84 {strides = array<i32>} : memref<4x12x32xf32, #tpu.memory_space<vmem>>, vector<4x1x32xf32>,
    %85 = vector.extract_strided_slice %19 {offsets = [12, 0], sizes = [4, 128], strides = [1, 1]} : vector<48x128xf32> to vector<4x128xf32>
    %cst_32 = arith.constant dense<0.000000e+00> : vector<4x128xf32>
    %86 = tpu.matmul %81, %1, %cst_32 {dimension_numbers = #tpu.dot_dimension_numbers<[1], [0], [0], [1], [0, 0, 1, 1], [], []>} : vector<4x32xf32>, vector<32x128xf32>, vector<4x128xf32> -> vector<4x128xf32>
    %87 = arith.addf %85, %86 : vector<4x128xf32>
    %88 = arith.negf %87 : vector<4x128xf32>
    %89 = math.exp %88 : vector<4x128xf32>
    %cst_33 = arith.constant 1.000000e+00 : f32
    %90 = vector.broadcast %cst_33 : f32 to vector<4x128xf32>
    %91 = arith.addf %90, %89 : vector<4x128xf32>
    %92 = arith.divf %90, %91 : vector<4x128xf32>
    %93 = math.tanh %87 : vector<4x128xf32>
    %94 = vector.extract_strided_slice %92 {offsets = [0, 0], sizes = [4, 32], strides = [1, 1]} : vector<4x128xf32> to vector<4x32xf32>
    %95 = vector.extract_strided_slice %92 {offsets = [0, 32], sizes = [4, 32], strides = [1, 1]} : vector<4x128xf32> to vector<4x32xf32>
    %96 = vector.extract_strided_slice %93 {offsets = [0, 64], sizes = [4, 32], strides = [1, 1]} : vector<4x128xf32> to vector<4x32xf32>
    %97 = vector.extract_strided_slice %92 {offsets = [0, 96], sizes = [4, 32], strides = [1, 1]} : vector<4x128xf32> to vector<4x32xf32>
    %98 = arith.mulf %95, %79 : vector<4x32xf32>
    %99 = arith.mulf %94, %96 : vector<4x32xf32>
    %100 = arith.addf %98, %99 : vector<4x32xf32>
    %101 = math.tanh %100 : vector<4x32xf32>
    %102 = arith.mulf %97, %101 : vector<4x32xf32>
    %c0_34 = arith.constant 0 : index
    %c3 = arith.constant 3 : index
    %c0_35 = arith.constant 0 : index
    %103 = vector.load %arg5[%c0_34, %c3, %c0_35] : memref<4x12x32xf32, #tpu.memory_space<vmem>>, vector<4x1x32xf32>
    %104 = vector.shape_cast %103 : vector<4x1x32xf32> to vector<4x32xf32>
    %105 = vector.shape_cast %102 : vector<4x32xf32> to vector<4x1x32xf32>
    tpu.vector_store %arg5[%c0_34, %c3, %c0_35], %105 {strides = array<i32>} : memref<4x12x32xf32, #tpu.memory_space<vmem>>, vector<4x1x32xf32>,
    %106 = vector.extract_strided_slice %19 {offsets = [16, 0], sizes = [4, 128], strides = [1, 1]} : vector<48x128xf32> to vector<4x128xf32>
    %cst_36 = arith.constant dense<0.000000e+00> : vector<4x128xf32>
    %107 = tpu.matmul %102, %1, %cst_36 {dimension_numbers = #tpu.dot_dimension_numbers<[1], [0], [0], [1], [0, 0, 1, 1], [], []>} : vector<4x32xf32>, vector<32x128xf32>, vector<4x128xf32> -> vector<4x128xf32>
    %108 = arith.addf %106, %107 : vector<4x128xf32>
    %109 = arith.negf %108 : vector<4x128xf32>
    %110 = math.exp %109 : vector<4x128xf32>
    %cst_37 = arith.constant 1.000000e+00 : f32
    %111 = vector.broadcast %cst_37 : f32 to vector<4x128xf32>
    %112 = arith.addf %111, %110 : vector<4x128xf32>
    %113 = arith.divf %111, %112 : vector<4x128xf32>
    %114 = math.tanh %108 : vector<4x128xf32>
    %115 = vector.extract_strided_slice %113 {offsets = [0, 0], sizes = [4, 32], strides = [1, 1]} : vector<4x128xf32> to vector<4x32xf32>
    %116 = vector.extract_strided_slice %113 {offsets = [0, 32], sizes = [4, 32], strides = [1, 1]} : vector<4x128xf32> to vector<4x32xf32>
    %117 = vector.extract_strided_slice %114 {offsets = [0, 64], sizes = [4, 32], strides = [1, 1]} : vector<4x128xf32> to vector<4x32xf32>
    %118 = vector.extract_strided_slice %113 {offsets = [0, 96], sizes = [4, 32], strides = [1, 1]} : vector<4x128xf32> to vector<4x32xf32>
    %119 = arith.mulf %116, %100 : vector<4x32xf32>
    %120 = arith.mulf %115, %117 : vector<4x32xf32>
    %121 = arith.addf %119, %120 : vector<4x32xf32>
    %122 = math.tanh %121 : vector<4x32xf32>
    %123 = arith.mulf %118, %122 : vector<4x32xf32>
    %c0_38 = arith.constant 0 : index
    %c4 = arith.constant 4 : index
    %c0_39 = arith.constant 0 : index
    %124 = vector.load %arg5[%c0_38, %c4, %c0_39] : memref<4x12x32xf32, #tpu.memory_space<vmem>>, vector<4x1x32xf32>
    %125 = vector.shape_cast %124 : vector<4x1x32xf32> to vector<4x32xf32>
    %126 = vector.shape_cast %123 : vector<4x32xf32> to vector<4x1x32xf32>
    tpu.vector_store %arg5[%c0_38, %c4, %c0_39], %126 {strides = array<i32>} : memref<4x12x32xf32, #tpu.memory_space<vmem>>, vector<4x1x32xf32>,
    %127 = vector.extract_strided_slice %19 {offsets = [20, 0], sizes = [4, 128], strides = [1, 1]} : vector<48x128xf32> to vector<4x128xf32>
    %cst_40 = arith.constant dense<0.000000e+00> : vector<4x128xf32>
    %128 = tpu.matmul %123, %1, %cst_40 {dimension_numbers = #tpu.dot_dimension_numbers<[1], [0], [0], [1], [0, 0, 1, 1], [], []>} : vector<4x32xf32>, vector<32x128xf32>, vector<4x128xf32> -> vector<4x128xf32>
    %129 = arith.addf %127, %128 : vector<4x128xf32>
    %130 = arith.negf %129 : vector<4x128xf32>
    %131 = math.exp %130 : vector<4x128xf32>
    %cst_41 = arith.constant 1.000000e+00 : f32
    %132 = vector.broadcast %cst_41 : f32 to vector<4x128xf32>
    %133 = arith.addf %132, %131 : vector<4x128xf32>
    %134 = arith.divf %132, %133 : vector<4x128xf32>
    %135 = math.tanh %129 : vector<4x128xf32>
    %136 = vector.extract_strided_slice %134 {offsets = [0, 0], sizes = [4, 32], strides = [1, 1]} : vector<4x128xf32> to vector<4x32xf32>
    %137 = vector.extract_strided_slice %134 {offsets = [0, 32], sizes = [4, 32], strides = [1, 1]} : vector<4x128xf32> to vector<4x32xf32>
    %138 = vector.extract_strided_slice %135 {offsets = [0, 64], sizes = [4, 32], strides = [1, 1]} : vector<4x128xf32> to vector<4x32xf32>
    %139 = vector.extract_strided_slice %134 {offsets = [0, 96], sizes = [4, 32], strides = [1, 1]} : vector<4x128xf32> to vector<4x32xf32>
    %140 = arith.mulf %137, %121 : vector<4x32xf32>
    %141 = arith.mulf %136, %138 : vector<4x32xf32>
    %142 = arith.addf %140, %141 : vector<4x32xf32>
    %143 = math.tanh %142 : vector<4x32xf32>
    %144 = arith.mulf %139, %143 : vector<4x32xf32>
    %c0_42 = arith.constant 0 : index
    %c5 = arith.constant 5 : index
    %c0_43 = arith.constant 0 : index
    %145 = vector.load %arg5[%c0_42, %c5, %c0_43] : memref<4x12x32xf32, #tpu.memory_space<vmem>>, vector<4x1x32xf32>
    %146 = vector.shape_cast %145 : vector<4x1x32xf32> to vector<4x32xf32>
    %147 = vector.shape_cast %144 : vector<4x32xf32> to vector<4x1x32xf32>
    tpu.vector_store %arg5[%c0_42, %c5, %c0_43], %147 {strides = array<i32>} : memref<4x12x32xf32, #tpu.memory_space<vmem>>, vector<4x1x32xf32>,
    %148 = vector.extract_strided_slice %19 {offsets = [24, 0], sizes = [4, 128], strides = [1, 1]} : vector<48x128xf32> to vector<4x128xf32>
    %cst_44 = arith.constant dense<0.000000e+00> : vector<4x128xf32>
    %149 = tpu.matmul %144, %1, %cst_44 {dimension_numbers = #tpu.dot_dimension_numbers<[1], [0], [0], [1], [0, 0, 1, 1], [], []>} : vector<4x32xf32>, vector<32x128xf32>, vector<4x128xf32> -> vector<4x128xf32>
    %150 = arith.addf %148, %149 : vector<4x128xf32>
    %151 = arith.negf %150 : vector<4x128xf32>
    %152 = math.exp %151 : vector<4x128xf32>
    %cst_45 = arith.constant 1.000000e+00 : f32
    %153 = vector.broadcast %cst_45 : f32 to vector<4x128xf32>
    %154 = arith.addf %153, %152 : vector<4x128xf32>
    %155 = arith.divf %153, %154 : vector<4x128xf32>
    %156 = math.tanh %150 : vector<4x128xf32>
    %157 = vector.extract_strided_slice %155 {offsets = [0, 0], sizes = [4, 32], strides = [1, 1]} : vector<4x128xf32> to vector<4x32xf32>
    %158 = vector.extract_strided_slice %155 {offsets = [0, 32], sizes = [4, 32], strides = [1, 1]} : vector<4x128xf32> to vector<4x32xf32>
    %159 = vector.extract_strided_slice %156 {offsets = [0, 64], sizes = [4, 32], strides = [1, 1]} : vector<4x128xf32> to vector<4x32xf32>
    %160 = vector.extract_strided_slice %155 {offsets = [0, 96], sizes = [4, 32], strides = [1, 1]} : vector<4x128xf32> to vector<4x32xf32>
    %161 = arith.mulf %158, %142 : vector<4x32xf32>
    %162 = arith.mulf %157, %159 : vector<4x32xf32>
    %163 = arith.addf %161, %162 : vector<4x32xf32>
    %164 = math.tanh %163 : vector<4x32xf32>
    %165 = arith.mulf %160, %164 : vector<4x32xf32>
    %c0_46 = arith.constant 0 : index
    %c6 = arith.constant 6 : index
    %c0_47 = arith.constant 0 : index
    %166 = vector.load %arg5[%c0_46, %c6, %c0_47] : memref<4x12x32xf32, #tpu.memory_space<vmem>>, vector<4x1x32xf32>
    %167 = vector.shape_cast %166 : vector<4x1x32xf32> to vector<4x32xf32>
    %168 = vector.shape_cast %165 : vector<4x32xf32> to vector<4x1x32xf32>
    tpu.vector_store %arg5[%c0_46, %c6, %c0_47], %168 {strides = array<i32>} : memref<4x12x32xf32, #tpu.memory_space<vmem>>, vector<4x1x32xf32>,
    %169 = vector.extract_strided_slice %19 {offsets = [28, 0], sizes = [4, 128], strides = [1, 1]} : vector<48x128xf32> to vector<4x128xf32>
    %cst_48 = arith.constant dense<0.000000e+00> : vector<4x128xf32>
    %170 = tpu.matmul %165, %1, %cst_48 {dimension_numbers = #tpu.dot_dimension_numbers<[1], [0], [0], [1], [0, 0, 1, 1], [], []>} : vector<4x32xf32>, vector<32x128xf32>, vector<4x128xf32> -> vector<4x128xf32>
    %171 = arith.addf %169, %170 : vector<4x128xf32>
    %172 = arith.negf %171 : vector<4x128xf32>
    %173 = math.exp %172 : vector<4x128xf32>
    %cst_49 = arith.constant 1.000000e+00 : f32
    %174 = vector.broadcast %cst_49 : f32 to vector<4x128xf32>
    %175 = arith.addf %174, %173 : vector<4x128xf32>
    %176 = arith.divf %174, %175 : vector<4x128xf32>
    %177 = math.tanh %171 : vector<4x128xf32>
    %178 = vector.extract_strided_slice %176 {offsets = [0, 0], sizes = [4, 32], strides = [1, 1]} : vector<4x128xf32> to vector<4x32xf32>
    %179 = vector.extract_strided_slice %176 {offsets = [0, 32], sizes = [4, 32], strides = [1, 1]} : vector<4x128xf32> to vector<4x32xf32>
    %180 = vector.extract_strided_slice %177 {offsets = [0, 64], sizes = [4, 32], strides = [1, 1]} : vector<4x128xf32> to vector<4x32xf32>
    %181 = vector.extract_strided_slice %176 {offsets = [0, 96], sizes = [4, 32], strides = [1, 1]} : vector<4x128xf32> to vector<4x32xf32>
    %182 = arith.mulf %179, %163 : vector<4x32xf32>
    %183 = arith.mulf %178, %180 : vector<4x32xf32>
    %184 = arith.addf %182, %183 : vector<4x32xf32>
    %185 = math.tanh %184 : vector<4x32xf32>
    %186 = arith.mulf %181, %185 : vector<4x32xf32>
    %c0_50 = arith.constant 0 : index
    %c7 = arith.constant 7 : index
    %c0_51 = arith.constant 0 : index
    %187 = vector.load %arg5[%c0_50, %c7, %c0_51] : memref<4x12x32xf32, #tpu.memory_space<vmem>>, vector<4x1x32xf32>
    %188 = vector.shape_cast %187 : vector<4x1x32xf32> to vector<4x32xf32>
    %189 = vector.shape_cast %186 : vector<4x32xf32> to vector<4x1x32xf32>
    tpu.vector_store %arg5[%c0_50, %c7, %c0_51], %189 {strides = array<i32>} : memref<4x12x32xf32, #tpu.memory_space<vmem>>, vector<4x1x32xf32>,
    %190 = vector.extract_strided_slice %19 {offsets = [32, 0], sizes = [4, 128], strides = [1, 1]} : vector<48x128xf32> to vector<4x128xf32>
    %cst_52 = arith.constant dense<0.000000e+00> : vector<4x128xf32>
    %191 = tpu.matmul %186, %1, %cst_52 {dimension_numbers = #tpu.dot_dimension_numbers<[1], [0], [0], [1], [0, 0, 1, 1], [], []>} : vector<4x32xf32>, vector<32x128xf32>, vector<4x128xf32> -> vector<4x128xf32>
    %192 = arith.addf %190, %191 : vector<4x128xf32>
    %193 = arith.negf %192 : vector<4x128xf32>
    %194 = math.exp %193 : vector<4x128xf32>
    %cst_53 = arith.constant 1.000000e+00 : f32
    %195 = vector.broadcast %cst_53 : f32 to vector<4x128xf32>
    %196 = arith.addf %195, %194 : vector<4x128xf32>
    %197 = arith.divf %195, %196 : vector<4x128xf32>
    %198 = math.tanh %192 : vector<4x128xf32>
    %199 = vector.extract_strided_slice %197 {offsets = [0, 0], sizes = [4, 32], strides = [1, 1]} : vector<4x128xf32> to vector<4x32xf32>
    %200 = vector.extract_strided_slice %197 {offsets = [0, 32], sizes = [4, 32], strides = [1, 1]} : vector<4x128xf32> to vector<4x32xf32>
    %201 = vector.extract_strided_slice %198 {offsets = [0, 64], sizes = [4, 32], strides = [1, 1]} : vector<4x128xf32> to vector<4x32xf32>
    %202 = vector.extract_strided_slice %197 {offsets = [0, 96], sizes = [4, 32], strides = [1, 1]} : vector<4x128xf32> to vector<4x32xf32>
    %203 = arith.mulf %200, %184 : vector<4x32xf32>
    %204 = arith.mulf %199, %201 : vector<4x32xf32>
    %205 = arith.addf %203, %204 : vector<4x32xf32>
    %206 = math.tanh %205 : vector<4x32xf32>
    %207 = arith.mulf %202, %206 : vector<4x32xf32>
    %c0_54 = arith.constant 0 : index
    %c8 = arith.constant 8 : index
    %c0_55 = arith.constant 0 : index
    %208 = vector.load %arg5[%c0_54, %c8, %c0_55] : memref<4x12x32xf32, #tpu.memory_space<vmem>>, vector<4x1x32xf32>
    %209 = vector.shape_cast %208 : vector<4x1x32xf32> to vector<4x32xf32>
    %210 = vector.shape_cast %207 : vector<4x32xf32> to vector<4x1x32xf32>
    tpu.vector_store %arg5[%c0_54, %c8, %c0_55], %210 {strides = array<i32>} : memref<4x12x32xf32, #tpu.memory_space<vmem>>, vector<4x1x32xf32>,
    %211 = vector.extract_strided_slice %19 {offsets = [36, 0], sizes = [4, 128], strides = [1, 1]} : vector<48x128xf32> to vector<4x128xf32>
    %cst_56 = arith.constant dense<0.000000e+00> : vector<4x128xf32>
    %212 = tpu.matmul %207, %1, %cst_56 {dimension_numbers = #tpu.dot_dimension_numbers<[1], [0], [0], [1], [0, 0, 1, 1], [], []>} : vector<4x32xf32>, vector<32x128xf32>, vector<4x128xf32> -> vector<4x128xf32>
    %213 = arith.addf %211, %212 : vector<4x128xf32>
    %214 = arith.negf %213 : vector<4x128xf32>
    %215 = math.exp %214 : vector<4x128xf32>
    %cst_57 = arith.constant 1.000000e+00 : f32
    %216 = vector.broadcast %cst_57 : f32 to vector<4x128xf32>
    %217 = arith.addf %216, %215 : vector<4x128xf32>
    %218 = arith.divf %216, %217 : vector<4x128xf32>
    %219 = math.tanh %213 : vector<4x128xf32>
    %220 = vector.extract_strided_slice %218 {offsets = [0, 0], sizes = [4, 32], strides = [1, 1]} : vector<4x128xf32> to vector<4x32xf32>
    %221 = vector.extract_strided_slice %218 {offsets = [0, 32], sizes = [4, 32], strides = [1, 1]} : vector<4x128xf32> to vector<4x32xf32>
    %222 = vector.extract_strided_slice %219 {offsets = [0, 64], sizes = [4, 32], strides = [1, 1]} : vector<4x128xf32> to vector<4x32xf32>
    %223 = vector.extract_strided_slice %218 {offsets = [0, 96], sizes = [4, 32], strides = [1, 1]} : vector<4x128xf32> to vector<4x32xf32>
    %224 = arith.mulf %221, %205 : vector<4x32xf32>
    %225 = arith.mulf %220, %222 : vector<4x32xf32>
    %226 = arith.addf %224, %225 : vector<4x32xf32>
    %227 = math.tanh %226 : vector<4x32xf32>
    %228 = arith.mulf %223, %227 : vector<4x32xf32>
    %c0_58 = arith.constant 0 : index
    %c9 = arith.constant 9 : index
    %c0_59 = arith.constant 0 : index
    %229 = vector.load %arg5[%c0_58, %c9, %c0_59] : memref<4x12x32xf32, #tpu.memory_space<vmem>>, vector<4x1x32xf32>
    %230 = vector.shape_cast %229 : vector<4x1x32xf32> to vector<4x32xf32>
    %231 = vector.shape_cast %228 : vector<4x32xf32> to vector<4x1x32xf32>
    tpu.vector_store %arg5[%c0_58, %c9, %c0_59], %231 {strides = array<i32>} : memref<4x12x32xf32, #tpu.memory_space<vmem>>, vector<4x1x32xf32>,
    %232 = vector.extract_strided_slice %19 {offsets = [40, 0], sizes = [4, 128], strides = [1, 1]} : vector<48x128xf32> to vector<4x128xf32>
    %cst_60 = arith.constant dense<0.000000e+00> : vector<4x128xf32>
    %233 = tpu.matmul %228, %1, %cst_60 {dimension_numbers = #tpu.dot_dimension_numbers<[1], [0], [0], [1], [0, 0, 1, 1], [], []>} : vector<4x32xf32>, vector<32x128xf32>, vector<4x128xf32> -> vector<4x128xf32>
    %234 = arith.addf %232, %233 : vector<4x128xf32>
    %235 = arith.negf %234 : vector<4x128xf32>
    %236 = math.exp %235 : vector<4x128xf32>
    %cst_61 = arith.constant 1.000000e+00 : f32
    %237 = vector.broadcast %cst_61 : f32 to vector<4x128xf32>
    %238 = arith.addf %237, %236 : vector<4x128xf32>
    %239 = arith.divf %237, %238 : vector<4x128xf32>
    %240 = math.tanh %234 : vector<4x128xf32>
    %241 = vector.extract_strided_slice %239 {offsets = [0, 0], sizes = [4, 32], strides = [1, 1]} : vector<4x128xf32> to vector<4x32xf32>
    %242 = vector.extract_strided_slice %239 {offsets = [0, 32], sizes = [4, 32], strides = [1, 1]} : vector<4x128xf32> to vector<4x32xf32>
    %243 = vector.extract_strided_slice %240 {offsets = [0, 64], sizes = [4, 32], strides = [1, 1]} : vector<4x128xf32> to vector<4x32xf32>
    %244 = vector.extract_strided_slice %239 {offsets = [0, 96], sizes = [4, 32], strides = [1, 1]} : vector<4x128xf32> to vector<4x32xf32>
    %245 = arith.mulf %242, %226 : vector<4x32xf32>
    %246 = arith.mulf %241, %243 : vector<4x32xf32>
    %247 = arith.addf %245, %246 : vector<4x32xf32>
    %248 = math.tanh %247 : vector<4x32xf32>
    %249 = arith.mulf %244, %248 : vector<4x32xf32>
    %c0_62 = arith.constant 0 : index
    %c10 = arith.constant 10 : index
    %c0_63 = arith.constant 0 : index
    %250 = vector.load %arg5[%c0_62, %c10, %c0_63] : memref<4x12x32xf32, #tpu.memory_space<vmem>>, vector<4x1x32xf32>
    %251 = vector.shape_cast %250 : vector<4x1x32xf32> to vector<4x32xf32>
    %252 = vector.shape_cast %249 : vector<4x32xf32> to vector<4x1x32xf32>
    tpu.vector_store %arg5[%c0_62, %c10, %c0_63], %252 {strides = array<i32>} : memref<4x12x32xf32, #tpu.memory_space<vmem>>, vector<4x1x32xf32>,
    %253 = vector.extract_strided_slice %19 {offsets = [44, 0], sizes = [4, 128], strides = [1, 1]} : vector<48x128xf32> to vector<4x128xf32>
    %cst_64 = arith.constant dense<0.000000e+00> : vector<4x128xf32>
    %254 = tpu.matmul %249, %1, %cst_64 {dimension_numbers = #tpu.dot_dimension_numbers<[1], [0], [0], [1], [0, 0, 1, 1], [], []>} : vector<4x32xf32>, vector<32x128xf32>, vector<4x128xf32> -> vector<4x128xf32>
    %255 = arith.addf %253, %254 : vector<4x128xf32>
    %256 = arith.negf %255 : vector<4x128xf32>
    %257 = math.exp %256 : vector<4x128xf32>
    %cst_65 = arith.constant 1.000000e+00 : f32
    %258 = vector.broadcast %cst_65 : f32 to vector<4x128xf32>
    %259 = arith.addf %258, %257 : vector<4x128xf32>
    %260 = arith.divf %258, %259 : vector<4x128xf32>
    %261 = math.tanh %255 : vector<4x128xf32>
    %262 = vector.extract_strided_slice %260 {offsets = [0, 0], sizes = [4, 32], strides = [1, 1]} : vector<4x128xf32> to vector<4x32xf32>
    %263 = vector.extract_strided_slice %260 {offsets = [0, 32], sizes = [4, 32], strides = [1, 1]} : vector<4x128xf32> to vector<4x32xf32>
    %264 = vector.extract_strided_slice %261 {offsets = [0, 64], sizes = [4, 32], strides = [1, 1]} : vector<4x128xf32> to vector<4x32xf32>
    %265 = vector.extract_strided_slice %260 {offsets = [0, 96], sizes = [4, 32], strides = [1, 1]} : vector<4x128xf32> to vector<4x32xf32>
    %266 = arith.mulf %263, %247 : vector<4x32xf32>
    %267 = arith.mulf %262, %264 : vector<4x32xf32>
    %268 = arith.addf %266, %267 : vector<4x32xf32>
    %269 = math.tanh %268 : vector<4x32xf32>
    %270 = arith.mulf %265, %269 : vector<4x32xf32>
    %c0_66 = arith.constant 0 : index
    %c11 = arith.constant 11 : index
    %c0_67 = arith.constant 0 : index
    %271 = vector.load %arg5[%c0_66, %c11, %c0_67] : memref<4x12x32xf32, #tpu.memory_space<vmem>>, vector<4x1x32xf32>
    %272 = vector.shape_cast %271 : vector<4x1x32xf32> to vector<4x32xf32>
    %273 = vector.shape_cast %270 : vector<4x32xf32> to vector<4x1x32xf32>
    tpu.vector_store %arg5[%c0_66, %c11, %c0_67], %273 {strides = array<i32>} : memref<4x12x32xf32, #tpu.memory_space<vmem>>, vector<4x1x32xf32>,
    %c0_68 = arith.constant 0 : index
    %c0_69 = arith.constant 0 : index
    %c0_70 = arith.constant 0 : index
    %274 = vector.load %arg5[%c0_68, %c0_69, %c0_70] : memref<4x12x32xf32, #tpu.memory_space<vmem>>, vector<4x12x32xf32>
    %275 = vector.extract_strided_slice %274 {offsets = [0, 0, 0], sizes = [2, 8, 32], strides = [1, 1, 1]} : vector<4x12x32xf32> to vector<2x8x32xf32>
    %276 = vector.extract_strided_slice %274 {offsets = [2, 0, 0], sizes = [2, 12, 32], strides = [1, 1, 1]} : vector<4x12x32xf32> to vector<2x12x32xf32>
    %cst_71 = arith.constant dense<0.000000e+00> : vector<2x32xf32>
    %277 = vector.multi_reduction <add>, %275, %cst_71 [1] : vector<2x8x32xf32> to vector<2x32xf32>
    %cst_72 = arith.constant 8.000000e+00 : f32
    %278 = vector.broadcast %cst_72 : f32 to vector<2x32xf32>
    %279 = arith.divf %277, %278 : vector<2x32xf32>
    %280 = vector.shape_cast %275 : vector<2x8x32xf32> to vector<16x32xf32>
    %cst_73 = arith.constant dense<0.000000e+00> : vector<16x32xf32>
    %281 = tpu.matmul %280, %3, %cst_73 {dimension_numbers = #tpu.dot_dimension_numbers<[1], [0], [0], [1], [0, 0, 1, 1], [], []>} : vector<16x32xf32>, vector<32x32xf32>, vector<16x32xf32> -> vector<16x32xf32>
    %282 = vector.shape_cast %281 : vector<16x32xf32> to vector<2x8x32xf32>
    %283 = vector.shape_cast %276 : vector<2x12x32xf32> to vector<24x32xf32>
    %cst_74 = arith.constant dense<0.000000e+00> : vector<24x32xf32>
    %284 = tpu.matmul %283, %5, %cst_74 {dimension_numbers = #tpu.dot_dimension_numbers<[1], [0], [0], [1], [0, 0, 1, 1], [], []>} : vector<24x32xf32>, vector<32x32xf32>, vector<24x32xf32> -> vector<24x32xf32>
    %285 = vector.shape_cast %284 : vector<24x32xf32> to vector<2x12x32xf32>
    %286 = vector.shape_cast %7 : vector<1x32xf32> to vector<1x1x32xf32>
    %287 = vector.shape_cast %286 : vector<1x1x32xf32> to vector<1x1x32xf32>
    %288 = vector.broadcast %287 : vector<1x1x32xf32> to vector<2x1x32xf32>
    %289 = vector.shape_cast %8 : vector<1x32xf32> to vector<1x1x32xf32>
    %290 = vector.shape_cast %289 : vector<1x1x32xf32> to vector<1x1x32xf32>
    %291 = vector.broadcast %290 : vector<1x1x32xf32> to vector<2x1x32xf32>
    %cst_75 = arith.constant 0.000000e+00 : f32
    %292 = vector.broadcast %cst_75 : f32 to vector<2x1xf32>
    %cst_76 = arith.constant dense<0.000000e+00> : vector<2x32xf32>
    %293 = tpu.matmul %279, %4, %cst_76 {dimension_numbers = #tpu.dot_dimension_numbers<[1], [0], [0], [1], [0, 0, 1, 1], [], []>} : vector<2x32xf32>, vector<32x32xf32>, vector<2x32xf32> -> vector<2x32xf32>
    %294 = vector.shape_cast %293 : vector<2x32xf32> to vector<2x1x32xf32>
    %295 = vector.broadcast %294 : vector<2x1x32xf32> to vector<2x8x32xf32>
    %296 = arith.addf %282, %295 : vector<2x8x32xf32>
    %297 = math.tanh %296 : vector<2x8x32xf32>
    "tpu.trace_start"() <{level = 10 : i32, message = "bqh,blh->bql"}> : () -> ()
    %cst_77 = arith.constant dense<0.000000e+00> : vector<2x1x8xf32>
    %298 = tpu.matmul %288, %297, %cst_77 {dimension_numbers = #tpu.dot_dimension_numbers<[2], [2], [1], [1], [0, 0, 0, 1, 1, 1], [0], [0]>} : vector<2x1x32xf32>, vector<2x8x32xf32>, vector<2x1x8xf32> -> vector<2x1x8xf32>
    "tpu.trace_stop"() : () -> ()
    %299 = vector.shape_cast %298 : vector<2x1x8xf32> to vector<2x8xf32>
    %cst_78 = arith.constant dense<0xFF800000> : vector<2xf32>
    %300 = vector.multi_reduction <maximumf>, %299, %cst_78 [1] : vector<2x8xf32> to vector<2xf32>
    %301 = vector.shape_cast %300 : vector<2xf32> to vector<2x1xf32>
    %302 = vector.broadcast %301 : vector<2x1xf32> to vector<2x8xf32>
    %303 = arith.subf %299, %302 : vector<2x8xf32>
    %304 = math.exp %303 : vector<2x8xf32>
    %cst_79 = arith.constant dense<0.000000e+00> : vector<2xf32>
    %305 = vector.multi_reduction <add>, %304, %cst_79 [1] : vector<2x8xf32> to vector<2xf32>
    %306 = vector.shape_cast %305 : vector<2xf32> to vector<2x1xf32>
    %307 = vector.broadcast %306 : vector<2x1xf32> to vector<2x8xf32>
    %308 = arith.divf %304, %307 : vector<2x8xf32>
    %309 = vector.shape_cast %308 : vector<2x8xf32> to vector<2x1x8xf32>
    "tpu.trace_start"() <{level = 10 : i32, message = "bql,blh->bqh"}> : () -> ()
    %cst_80 = arith.constant dense<0.000000e+00> : vector<2x1x32xf32>
    %310 = tpu.matmul %309, %275, %cst_80 {dimension_numbers = #tpu.dot_dimension_numbers<[2], [1], [1], [2], [0, 0, 0, 1, 1, 2], [0], [0]>} : vector<2x1x8xf32>, vector<2x8x32xf32>, vector<2x1x32xf32> -> vector<2x1x32xf32>
    "tpu.trace_stop"() : () -> ()
    %311 = vector.shape_cast %310 : vector<2x1x32xf32> to vector<2x32xf32>
    %312 = arith.addf %279, %311 : vector<2x32xf32>
    %cst_81 = arith.constant dense<0.000000e+00> : vector<2x32xf32>
    %313 = tpu.matmul %311, %6, %cst_81 {dimension_numbers = #tpu.dot_dimension_numbers<[1], [0], [0], [1], [0, 0, 1, 1], [], []>} : vector<2x32xf32>, vector<32x32xf32>, vector<2x32xf32> -> vector<2x32xf32>
    %314 = vector.shape_cast %313 : vector<2x32xf32> to vector<2x1x32xf32>
    %315 = vector.broadcast %314 : vector<2x1x32xf32> to vector<2x12x32xf32>
    %316 = arith.addf %285, %315 : vector<2x12x32xf32>
    %317 = math.tanh %316 : vector<2x12x32xf32>
    "tpu.trace_start"() <{level = 10 : i32, message = "bqh,blh->bql"}> : () -> ()
    %cst_82 = arith.constant dense<0.000000e+00> : vector<2x1x12xf32>
    %318 = tpu.matmul %291, %317, %cst_82 {dimension_numbers = #tpu.dot_dimension_numbers<[2], [2], [1], [1], [0, 0, 0, 1, 1, 1], [0], [0]>} : vector<2x1x32xf32>, vector<2x12x32xf32>, vector<2x1x12xf32> -> vector<2x1x12xf32>
    "tpu.trace_stop"() : () -> ()
    %319 = vector.shape_cast %318 : vector<2x1x12xf32> to vector<2x12xf32>
    %cst_83 = arith.constant dense<0xFF800000> : vector<2xf32>
    %320 = vector.multi_reduction <maximumf>, %319, %cst_83 [1] : vector<2x12xf32> to vector<2xf32>
    %321 = vector.shape_cast %320 : vector<2xf32> to vector<2x1xf32>
    %322 = vector.broadcast %321 : vector<2x1xf32> to vector<2x12xf32>
    %323 = arith.subf %319, %322 : vector<2x12xf32>
    %324 = math.exp %323 : vector<2x12xf32>
    %cst_84 = arith.constant dense<0.000000e+00> : vector<2xf32>
    %325 = vector.multi_reduction <add>, %324, %cst_84 [1] : vector<2x12xf32> to vector<2xf32>
    %326 = vector.shape_cast %325 : vector<2xf32> to vector<2x1xf32>
    %327 = vector.broadcast %326 : vector<2x1xf32> to vector<2x12xf32>
    %328 = arith.divf %324, %327 : vector<2x12xf32>
    %329 = vector.shape_cast %328 : vector<2x12xf32> to vector<2x1x12xf32>
    "tpu.trace_start"() <{level = 10 : i32, message = "bql,blh->bqh"}> : () -> ()
    %cst_85 = arith.constant dense<0.000000e+00> : vector<2x1x32xf32>
    %330 = tpu.matmul %329, %276, %cst_85 {dimension_numbers = #tpu.dot_dimension_numbers<[2], [1], [1], [2], [0, 0, 0, 1, 1, 2], [0], [0]>} : vector<2x1x12xf32>, vector<2x12x32xf32>, vector<2x1x32xf32> -> vector<2x1x32xf32>
    "tpu.trace_stop"() : () -> ()
    %331 = vector.shape_cast %330 : vector<2x1x32xf32> to vector<2x32xf32>
    %332 = arith.mulf %311, %331 : vector<2x32xf32>
    %cst_86 = arith.constant dense<0.000000e+00> : vector<2xf32>
    %333 = vector.multi_reduction <add>, %332, %cst_86 [1] : vector<2x32xf32> to vector<2xf32>
    %334 = vector.shape_cast %333 : vector<2xf32> to vector<2x1xf32>
    %335 = arith.mulf %311, %311 : vector<2x32xf32>
    %cst_87 = arith.constant dense<0.000000e+00> : vector<2xf32>
    %336 = vector.multi_reduction <add>, %335, %cst_87 [1] : vector<2x32xf32> to vector<2xf32>
    %337 = vector.shape_cast %336 : vector<2xf32> to vector<2x1xf32>
    %338 = arith.mulf %331, %331 : vector<2x32xf32>
    %cst_88 = arith.constant dense<0.000000e+00> : vector<2xf32>
    %339 = vector.multi_reduction <add>, %338, %cst_88 [1] : vector<2x32xf32> to vector<2xf32>
    %340 = vector.shape_cast %339 : vector<2xf32> to vector<2x1xf32>
    %cst_89 = arith.constant 1.000000e-16 : f32
    %341 = vector.broadcast %cst_89 : f32 to vector<2x1xf32>
    %342 = arith.maximumf %337, %341 : vector<2x1xf32>
    %343 = math.rsqrt %342 : vector<2x1xf32>
    %cst_90 = arith.constant 1.000000e-16 : f32
    %344 = vector.broadcast %cst_90 : f32 to vector<2x1xf32>
    %345 = arith.maximumf %340, %344 : vector<2x1xf32>
    %346 = math.rsqrt %345 : vector<2x1xf32>
    %347 = arith.mulf %343, %346 : vector<2x1xf32>
    %348 = arith.mulf %334, %347 : vector<2x1xf32>
    %349 = arith.addf %292, %348 : vector<2x1xf32>
    %cst_91 = arith.constant dense<0.000000e+00> : vector<2x32xf32>
    %350 = tpu.matmul %312, %4, %cst_91 {dimension_numbers = #tpu.dot_dimension_numbers<[1], [0], [0], [1], [0, 0, 1, 1], [], []>} : vector<2x32xf32>, vector<32x32xf32>, vector<2x32xf32> -> vector<2x32xf32>
    %351 = vector.shape_cast %350 : vector<2x32xf32> to vector<2x1x32xf32>
    %352 = vector.broadcast %351 : vector<2x1x32xf32> to vector<2x8x32xf32>
    %353 = arith.addf %282, %352 : vector<2x8x32xf32>
    %354 = math.tanh %353 : vector<2x8x32xf32>
    "tpu.trace_start"() <{level = 10 : i32, message = "bqh,blh->bql"}> : () -> ()
    %cst_92 = arith.constant dense<0.000000e+00> : vector<2x1x8xf32>
    %355 = tpu.matmul %288, %354, %cst_92 {dimension_numbers = #tpu.dot_dimension_numbers<[2], [2], [1], [1], [0, 0, 0, 1, 1, 1], [0], [0]>} : vector<2x1x32xf32>, vector<2x8x32xf32>, vector<2x1x8xf32> -> vector<2x1x8xf32>
    "tpu.trace_stop"() : () -> ()
    %356 = vector.shape_cast %355 : vector<2x1x8xf32> to vector<2x8xf32>
    %cst_93 = arith.constant dense<0xFF800000> : vector<2xf32>
    %357 = vector.multi_reduction <maximumf>, %356, %cst_93 [1] : vector<2x8xf32> to vector<2xf32>
    %358 = vector.shape_cast %357 : vector<2xf32> to vector<2x1xf32>
    %359 = vector.broadcast %358 : vector<2x1xf32> to vector<2x8xf32>
    %360 = arith.subf %356, %359 : vector<2x8xf32>
    %361 = math.exp %360 : vector<2x8xf32>
    %cst_94 = arith.constant dense<0.000000e+00> : vector<2xf32>
    %362 = vector.multi_reduction <add>, %361, %cst_94 [1] : vector<2x8xf32> to vector<2xf32>
    %363 = vector.shape_cast %362 : vector<2xf32> to vector<2x1xf32>
    %364 = vector.broadcast %363 : vector<2x1xf32> to vector<2x8xf32>
    %365 = arith.divf %361, %364 : vector<2x8xf32>
    %366 = vector.shape_cast %365 : vector<2x8xf32> to vector<2x1x8xf32>
    "tpu.trace_start"() <{level = 10 : i32, message = "bql,blh->bqh"}> : () -> ()
    %cst_95 = arith.constant dense<0.000000e+00> : vector<2x1x32xf32>
    %367 = tpu.matmul %366, %275, %cst_95 {dimension_numbers = #tpu.dot_dimension_numbers<[2], [1], [1], [2], [0, 0, 0, 1, 1, 2], [0], [0]>} : vector<2x1x8xf32>, vector<2x8x32xf32>, vector<2x1x32xf32> -> vector<2x1x32xf32>
    "tpu.trace_stop"() : () -> ()
    %368 = vector.shape_cast %367 : vector<2x1x32xf32> to vector<2x32xf32>
    %cst_96 = arith.constant dense<0.000000e+00> : vector<2x32xf32>
    %369 = tpu.matmul %368, %6, %cst_96 {dimension_numbers = #tpu.dot_dimension_numbers<[1], [0], [0], [1], [0, 0, 1, 1], [], []>} : vector<2x32xf32>, vector<32x32xf32>, vector<2x32xf32> -> vector<2x32xf32>
    %370 = vector.shape_cast %369 : vector<2x32xf32> to vector<2x1x32xf32>
    %371 = vector.broadcast %370 : vector<2x1x32xf32> to vector<2x12x32xf32>
    %372 = arith.addf %285, %371 : vector<2x12x32xf32>
    %373 = math.tanh %372 : vector<2x12x32xf32>
    "tpu.trace_start"() <{level = 10 : i32, message = "bqh,blh->bql"}> : () -> ()
    %cst_97 = arith.constant dense<0.000000e+00> : vector<2x1x12xf32>
    %374 = tpu.matmul %291, %373, %cst_97 {dimension_numbers = #tpu.dot_dimension_numbers<[2], [2], [1], [1], [0, 0, 0, 1, 1, 1], [0], [0]>} : vector<2x1x32xf32>, vector<2x12x32xf32>, vector<2x1x12xf32> -> vector<2x1x12xf32>
    "tpu.trace_stop"() : () -> ()
    %375 = vector.shape_cast %374 : vector<2x1x12xf32> to vector<2x12xf32>
    %cst_98 = arith.constant dense<0xFF800000> : vector<2xf32>
    %376 = vector.multi_reduction <maximumf>, %375, %cst_98 [1] : vector<2x12xf32> to vector<2xf32>
    %377 = vector.shape_cast %376 : vector<2xf32> to vector<2x1xf32>
    %378 = vector.broadcast %377 : vector<2x1xf32> to vector<2x12xf32>
    %379 = arith.subf %375, %378 : vector<2x12xf32>
    %380 = math.exp %379 : vector<2x12xf32>
    %cst_99 = arith.constant dense<0.000000e+00> : vector<2xf32>
    %381 = vector.multi_reduction <add>, %380, %cst_99 [1] : vector<2x12xf32> to vector<2xf32>
    %382 = vector.shape_cast %381 : vector<2xf32> to vector<2x1xf32>
    %383 = vector.broadcast %382 : vector<2x1xf32> to vector<2x12xf32>
    %384 = arith.divf %380, %383 : vector<2x12xf32>
    %385 = vector.shape_cast %384 : vector<2x12xf32> to vector<2x1x12xf32>
    "tpu.trace_start"() <{level = 10 : i32, message = "bql,blh->bqh"}> : () -> ()
    %cst_100 = arith.constant dense<0.000000e+00> : vector<2x1x32xf32>
    %386 = tpu.matmul %385, %276, %cst_100 {dimension_numbers = #tpu.dot_dimension_numbers<[2], [1], [1], [2], [0, 0, 0, 1, 1, 2], [0], [0]>} : vector<2x1x12xf32>, vector<2x12x32xf32>, vector<2x1x32xf32> -> vector<2x1x32xf32>
    "tpu.trace_stop"() : () -> ()
    %387 = vector.shape_cast %386 : vector<2x1x32xf32> to vector<2x32xf32>
    %388 = arith.mulf %368, %387 : vector<2x32xf32>
    %cst_101 = arith.constant dense<0.000000e+00> : vector<2xf32>
    %389 = vector.multi_reduction <add>, %388, %cst_101 [1] : vector<2x32xf32> to vector<2xf32>
    %390 = vector.shape_cast %389 : vector<2xf32> to vector<2x1xf32>
    %391 = arith.mulf %368, %368 : vector<2x32xf32>
    %cst_102 = arith.constant dense<0.000000e+00> : vector<2xf32>
    %392 = vector.multi_reduction <add>, %391, %cst_102 [1] : vector<2x32xf32> to vector<2xf32>
    %393 = vector.shape_cast %392 : vector<2xf32> to vector<2x1xf32>
    %394 = arith.mulf %387, %387 : vector<2x32xf32>
    %cst_103 = arith.constant dense<0.000000e+00> : vector<2xf32>
    %395 = vector.multi_reduction <add>, %394, %cst_103 [1] : vector<2x32xf32> to vector<2xf32>
    %396 = vector.shape_cast %395 : vector<2xf32> to vector<2x1xf32>
    %cst_104 = arith.constant 1.000000e-16 : f32
    %397 = vector.broadcast %cst_104 : f32 to vector<2x1xf32>
    %398 = arith.maximumf %393, %397 : vector<2x1xf32>
    %399 = math.rsqrt %398 : vector<2x1xf32>
    %cst_105 = arith.constant 1.000000e-16 : f32
    %400 = vector.broadcast %cst_105 : f32 to vector<2x1xf32>
    %401 = arith.maximumf %396, %400 : vector<2x1xf32>
    %402 = math.rsqrt %401 : vector<2x1xf32>
    %403 = arith.mulf %399, %402 : vector<2x1xf32>
    %404 = arith.mulf %390, %403 : vector<2x1xf32>
    %405 = arith.addf %349, %404 : vector<2x1xf32>
    %cst_106 = arith.constant 5.000000e-01 : f32
    %406 = vector.broadcast %cst_106 : f32 to vector<2x1xf32>
    %407 = arith.mulf %405, %406 : vector<2x1xf32>
    %c0_107 = arith.constant 0 : index
    %c0_108 = arith.constant 0 : index
    %408 = vector.load %arg4[%c0_107, %c0_108] : memref<2x1xf32, #tpu.memory_space<vmem>>, vector<2x1xf32>
    tpu.vector_store %arg4[%c0_107, %c0_108], %407 {strides = array<i32>} : memref<2x1xf32, #tpu.memory_space<vmem>>, vector<2x1xf32>,
    return
  }
}

</mosaic_0001>

<bundles_post_ra>
// kernel: multihop_attention.1
= control target key start
LH: loop header
LB: loop body
LE: loop exit
PB: predicated region body
PF: predicated region fallthrough
CT: control target
= control target key end

     0   :  { %v5126_v0 = vmov 0   ;;  %v5127_v17 = vmov 0.0   ;;  %v50_v18 = vlaneseq  ;;  %vm95_vm0 = vcmask 457728   ;;  %s5130_s5 = smov 32   ;;  %s6275_s0 = inlined_call_operand.vmem [shape: s32[48,1], index: 0, kind: input, shape index: {}]   ;;  %s6276_s1 = inlined_call_operand.vmem [shape: f32[56,32], index: 1, kind: input, shape index: {}]   ;;  %s6277_s2 = inlined_call_operand.vmem [shape: f32[65,128], index: 2, kind: input, shape index: {}]   ;;  %s6278_s3 = inlined_call_operand.vmem [shape: f32[130,32], index: 3, kind: input, shape index: {}]   ;;  %s6279_s4 = inlined_call_operand.vmem [shape: f32[2,1], index: 4, kind: output, shape index: {}]  }
   0x1   :  { %4954 = vset.pattern.permute.xlu1 %v5126_v0  ;;  %4953 = vset.pattern.permute.xlu0 %v5126_v0  ;;  %v46_v1 = vld [vmem:[%s6275_s0 + $0x10] sm:$0xff]  ;;  %v44_v2 = vld [vmem:[%s6275_s0] sm:$0xff]  ;;  %v47_v3 = vld [vmem:[%s6275_s0 + $0x18] sm:$0xff]  ;;  %vm5128_vm7 = vmmov 0   ;;  %vm213_vm8 = vcmask 261120   ;;  %vm478_vm9 = vcmask 253952  }
   0x2   :  { %59 = vperm.xlu1 %4954, %v46_v1   ;;  %53 = vperm.xlu0 %4953, %v44_v2   ;;  %v45_v4 = vld [vmem:[%s6275_s0 + $0x8] sm:$0xff]  ;;  %v94_v5 = vld [vmem:[%s6276_s1 + $0x30] sm:$0xff]  ;;  %v92_v7 = vld [vmem:[%s6276_s1 + $0x20] sm:$0xff]  ;;  %v51_v19 = vand.u32 127, %v50_v18  ;;  %vm2471_vm10 = vcmask 1041409   ;;  %vm2736_vm11 = vcmask 58368  }
   0x3   :  { %4607 = vmatprep.subr.mxu0 %v94_v5  ;;  %v93_v6 = vld [vmem:[%s6276_s1 + $0x28] sm:$0xff]  ;;  %v48_v9 = vld [vmem:[%s6275_s0 + $0x20] sm:$0xff]  ;;  %v91_v10 = vld [vmem:[%s6276_s1 + $0x18] sm:$0xff]  ;;  %vm2766_vm12 = vcmask 64512   ;;  %vm3238_vm13 = vcmask 1043456   ;;  %vm3204_vm14 = vcmask 91136  }
   0x4   :  { %4608 = vmatpush3.msra.mxu0 %v94_v5  ;;  %v49_v8 = vld [vmem:[%s6275_s0 + $0x28] sm:$0xff]  ;;  %v90_v11 = vld [vmem:[%s6276_s1 + $0x10] sm:$0xff]  ;;  %v20_v13 = vld [vmem:[%s6277_s2 + $0x18] sm:$0xff]  ;;  %vm3234_vm15 = vcmask 97280  }
   0x5   :  { %4609 = vmatprep.subr.mxu0 %v93_v6  ;;  %v89_v12 = vld [vmem:[%s6276_s1 + $0x8] sm:$0xff]  ;;  %v19_v14 = vld [vmem:[%s6277_s2 + $0x10] sm:$0xff]  ;;  %4630 = vmatprep.subr.mxu1 %v20_v13  ;;  %v88_v15 = vld [vmem:[%s6276_s1] sm:$0xff] }
   0x6   :  { %62 = vperm.xlu1 %4954, %v47_v3   ;;  %56 = vperm.xlu0 %4953, %v45_v4   ;;  %v18_v16 = vld [vmem:[%s6277_s2 + $0x8] sm:$0xff]  ;;  %v17_v32 = vld [vmem:[%s6277_s2] sm:$0xff]  ;;  %v5226_v33 = vld [vmem:[%s6277_s2 + $0x38] sm:$0xff] }
   0x7   :  { %4610 = vmatpush3.msra.mxu0 %v93_v6  ;;  %4631 = vmatpush3.msra.mxu1 %v20_v13  ;;  %v5233_v34 = vld [vmem:[%s6277_s2 + $0x30] sm:$0xff]  ;;  %v5240_v35 = vld [vmem:[%s6277_s2 + $0x28] sm:$0xff]  ;;  %v5246_v36 = vld [vmem:[%s6277_s2 + $0x20] sm:$0xff] }
   0x8   :  { %4611 = vmatprep.subr.mxu0 %v92_v7  ;;  %4632 = vmatprep.subr.mxu1 %v19_v14  ;;  %v4380_v43 = vld [vmem:[%s6277_s2 + $0x40] ss:$0 sm:$0xff]  ;;  %s5129_s2 = smov 64  }
   0x9   :  { %4612 = vmatpush3.msra.mxu0 %v92_v7  ;;  %4633 = vmatpush3.msra.mxu1 %v19_v14 }
   0xa   :  { %68 = vperm.xlu1 %4954, %v49_v8   ;;  %65 = vperm.xlu0 %4953, %v48_v9  }
   0xb   :  { %4613 = vmatprep.subr.mxu0 %v91_v10  ;;  %4634 = vmatprep.subr.mxu1 %v18_v16 }
   0xc   :  { %4614 = vmatpush3.msra.mxu0 %v91_v10  ;;  %4635 = vmatpush3.msra.mxu1 %v18_v16 }
   0xd   :  { %4615 = vmatprep.subr.mxu0 %v90_v11  ;;  %4636 = vmatprep.subr.mxu1 %v17_v32 }
   0xe   :  { %4616 = vmatpush3.msra.mxu0 %v90_v11  ;;  %4637 = vmatpush3.msra.mxu1 %v17_v32 }
   0xf   :  { %4617 = vmatprep.subr.mxu0 %v89_v12  ;;  %4647 = vmatprep.subr.mxu1 %v5127_v17 }
  0x10   :  { %4618 = vmatpush3.msra.mxu0 %v89_v12 }
  0x11   :  { %4619 = vmatprep.subr.mxu0 %v88_v15 }
  0x12   :  { %4620 = vmatpush3.msra.mxu0 %v88_v15 }
  0x13   :  { %4658 = vmatprep.subr.mxu0 %v5127_v17 }
  0x7d   :  { %v60_v20 = vpop.permute.xlu1 %59  ;;  %v54_v21 = vpop.permute.xlu0 %53 }
  0x7e   :  { %vm70_vm1 = vcmp.eq.s32.totalorder %v54_v21, %v51_v19  ;;  %vm72_vm2 = vcmp.eq.s32.totalorder %v60_v20, %v51_v19 }
  0x7f   :  { %v4368_v22 = vsel %vm70_vm1, 1.0, %v5127_v17  ;;  %v4370_v25 = vsel %vm72_vm2, 1.0, %v5127_v17  ;;  %vm4362_vm1 = vcmask 1024  }
  0x80   :  { %4621 = vmatprep.mubr.msk.f32.mxu0 %vm95_vm0, %v4368_v22 }
  0x81   :  { %v63_v23 = vpop.permute.xlu1 %62  ;;  %v57_v24 = vpop.permute.xlu0 %56 }
  0x82   :  { %vm71_vm3 = vcmp.eq.s32.totalorder %v57_v24, %v51_v19  ;;  %vm73_vm4 = vcmp.eq.s32.totalorder %v63_v23, %v51_v19 }
  0x83   :  { %v4369_v26 = vsel %vm71_vm3, 1.0, %v5127_v17  ;;  %v4371_v29 = vsel %vm73_vm4, 1.0, %v5127_v17 }
  0x84   :  { %4622 = vmatmul.mubr.msk.f32.vlgmr.msra.gmra.mxu0 %vm95_vm0, %v4369_v26 }
  0x85   :  { %v69_v27 = vpop.permute.xlu1 %68  ;;  %4624 = vmatprep.mubr.msk.f32.mxu0 %vm95_vm0, %v4370_v25  ;;  %v66_v28 = vpop.permute.xlu0 %65  ;;  %4659 = vmatpush3.msra.mxu0 %v5226_v33 }
  0x86   :  { %vm74_vm5 = vcmp.eq.s32.totalorder %v66_v28, %v51_v19  ;;  %vm75_vm6 = vcmp.eq.s32.totalorder %v69_v27, %v51_v19  ;;  %4660 = vmatprep.subr.mxu0 %v5127_v17 }
  0x87   :  { %v4372_v30 = vsel %vm74_vm5, 1.0, %v5127_v17  ;;  %v4373_v31 = vsel %vm75_vm6, 1.0, %v5127_v17  ;;  %4661 = vmatpush3.msra.mxu0 %v5233_v34 }
  0x88   :  { %4625 = vmatmul.mubr.msk.f32.gmra.mxu0 %vm95_vm0, %v4371_v29  ;;  %4662 = vmatprep.subr.mxu0 %v5127_v17 }
  0x89   :  { %4627 = vmatprep.mubr.msk.f32.mxu0 %vm95_vm0, %v4372_v30  ;;  %4663 = vmatpush3.msra.mxu0 %v5240_v35 }
  0x8a   :  { %4664 = vmatprep.subr.mxu0 %v5127_v17 }
  0x8b   :  { %4665 = vmatpush3.msra.mxu0 %v5246_v36 }
  0x8c   :  { %4628 = vmatmul.mubr.msk.f32.gmra.mxu0 %vm95_vm0, %v4373_v31  ;;  %4680 = vmatprep.subr.mxu0 %v5127_v17  ;;  %vm3393_vm0 = vcmask 254976  }
  0x8d   :  { %4666 = vmatprep.mubr.msk.f32.mxu0 %vm5128_vm7, %v5127_v17 }
 0x144   :  { %v4623_v37 = vpop.f32.mrf.mxu0 }
 0x146   :  { %v180_v38 = vpop.f32.mrf.mxu0 }
 0x147   :  { %4638 = vmatprep.mubr.msk.f32.mxu1 %vm213_vm8, %v180_v38 }
 0x148   :  { %v4626_v39 = vpop.f32.mrf.mxu0  ;;  %4639 = vmatmul.mubr.msk.f32.vlgmr.msra.gmra.mxu1 %vm213_vm8, %v4623_v37 }
 0x149   :  { %4648 = vmatpush3.msra.mxu1 %v5226_v33 }
 0x14a   :  { %v190_v40 = vpop.f32.mrf.mxu0  ;;  %4649 = vmatprep.subr.mxu1 %v5127_v17 }
 0x14b   :  { %4641 = vmatprep.mubr.msk.f32.mxu1 %vm213_vm8, %v190_v40  ;;  %4650 = vmatpush3.msra.mxu1 %v5233_v34 }
 0x14c   :  { %v4629_v41 = vpop.f32.mrf.mxu0  ;;  %4642 = vmatmul.mubr.msk.f32.gmra.mxu1 %vm213_vm8, %v4626_v39  ;;  %4651 = vmatprep.subr.mxu1 %v5127_v17 }
 0x14d   :  { %4652 = vmatpush3.msra.mxu1 %v5240_v35 }
 0x14e   :  { %v200_v42 = vpop.f32.mrf.mxu0  ;;  %4653 = vmatprep.subr.mxu1 %v5127_v17 }
 0x14f   :  { %4644 = vmatprep.mubr.msk.f32.mxu1 %vm213_vm8, %v200_v42  ;;  %4654 = vmatpush3.msra.mxu1 %v5246_v36 }
 0x150   :  { %4645 = vmatmul.mubr.msk.f32.gmra.mxu1 %vm213_vm8, %v4629_v41  ;;  %4669 = vmatprep.subr.mxu1 %v5127_v17 }
 0x151   :  { %4655 = vmatprep.mubr.msk.f32.mxu1 %vm5128_vm7, %v5127_v17 }
 0x154   :  { %4656 = vmatmul.mubr.f32.vlgmr.msra.gmra.mxu1 %v5127_v17 }
 0x155   :  { %4670 = vmatpush3.msra.mxu1 %v5226_v33  ;;  %4677 = vmatprep.mubr.msk.f32.mxu1 %vm5128_vm7, %v5127_v17 }
 0x156   :  { %4671 = vmatprep.subr.mxu1 %v5127_v17 }
 0x157   :  { %4672 = vmatpush3.msra.mxu1 %v5233_v34 }
 0x158   :  { %4673 = vmatprep.subr.mxu1 %v5127_v17 }
 0x159   :  { %4674 = vmatpush3.msra.mxu1 %v5240_v35 }
 0x15a   :  { %4675 = vmatprep.subr.mxu1 %v5127_v17 }
 0x15b   :  { %4676 = vmatpush3.msra.mxu1 %v5246_v36 }
 0x15c   :  { %4691 = vmatprep.subr.mxu1 %v5127_v17 }
 0x208   :  { %v4640_v44 = vpop.f32.mrf.mxu1 }
 0x209   :  { %v5283_v45 = vadd.f32 %v4640_v44, %v4380_v43 }
 0x20a   :  { %v298_v46 = vpop.f32.mrf.mxu1 }
 0x20b   :  { %v299_v54 = vadd.f32 %v4380_v43, %v298_v46 }
 0x20c   :  { %v4643_v47 = vpop.f32.mrf.mxu1 }
 0x20d   :  { %v5285_v48 = vadd.f32 %v4643_v47, %v4380_v43 }
 0x20e   :  { %v308_v49 = vpop.f32.mrf.mxu1 }
 0x20f   :  { %v5287_v50 = vadd.f32 %v4380_v43, %v308_v49 }
 0x210   :  { %v4646_v51 = vpop.f32.mrf.mxu1 }
 0x211   :  { %v5289_v52 = vadd.f32 %v4646_v51, %v4380_v43 }
 0x212   :  { %v318_v53 = vpop.f32.mrf.mxu1 }
 0x213   :  { %v5291_v55 = vadd.f32 %v4380_v43, %v318_v53 }
 0x214   :  { %v396_v56 = vpop.f32.mrf.mxu1 }
 0x215   :  { %v400_v57 = vadd.f32 %v396_v56, %v299_v54 }
 0x216   :  { %v4657_v58 = vpop.f32.mrf.mxu1 }
 0x217   :  { %4958 = vtanh.f32 %v400_v57  ;;  %v4387_v60 = vmul.f32 -1.442695, %v400_v57 }
 0x219   :  { %4960 = vpow2.f32 %v4387_v60 }
 0x224   :  { %v4959_v59 = vpop.eup %4958 }
 0x225   :  { %410 = vrot.lane.b32.xlu0 %v4959_v59, %s5129_s2 }
 0x226   :  { %v4961_v61 = vpop.eup %4960 }
 0x227   :  { %v404_v62 = vadd.f32 1.0, %v4961_v61 }
 0x229   :  { %4962 = vrcp.f32 %v404_v62 }
 0x236   :  { %v4963_v63 = vpop.eup %4962 }
 0x237   :  { %v408_v2 = vmul.f32 0.0, %v4963_v63 }
 0x297   :  { %v411_v0 = vpop.permute.xlu0 %410 }
 0x298   :  { %v413_v1 = vmul.f32 %v4963_v63, %v411_v0 }
 0x29a   :  { %415 = vrot.lane.b32.xlu1 %v413_v1, %s5130_s5 }
 0x30c   :  { %v416_v3 = vpop.permute.xlu1 %415 }
 0x30d   :  { %v418_v4 = vadd.f32 %v416_v3, %v408_v2 }
 0x30f   :  { %4964 = vtanh.f32 %v418_v4  ;;  %v569_v22 = vrot.slane %v418_v4, 4 }
 0x31c   :  { %v4965_v5 = vpop.eup %4964 }
 0x31d   :  { %421 = vrot.lane.b32.xlu0 %v4965_v5, %s5129_s2 }
 0x38f   :  { %v422_v6 = vpop.permute.xlu0 %421 }
 0x390   :  { %v5296_v7 = vmul.f32 %v4963_v63, %v422_v6 }
 0x392   :  { %483 = vrot.lane.b32.xlu1 %v5296_v7, %s5130_s5 }
 0x404   :  { %v484_v8 = vpop.permute.xlu1 %483 }
 0x405   :  { %4667 = vmatmul.mubr.msk.f32.vlgmr.msra.gmra.mxu0 %vm213_vm8, %v484_v8 }
 0x406   :  { %4681 = vmatpush3.msra.mxu0 %v5226_v33  ;;  %4688 = vmatprep.mubr.msk.f32.mxu0 %vm5128_vm7, %v5127_v17 }
 0x407   :  { %4682 = vmatprep.subr.mxu0 %v5127_v17 }
 0x408   :  { %4683 = vmatpush3.msra.mxu0 %v5233_v34 }
 0x409   :  { %4684 = vmatprep.subr.mxu0 %v5127_v17 }
 0x40a   :  { %4685 = vmatpush3.msra.mxu0 %v5240_v35 }
 0x40b   :  { %4686 = vmatprep.subr.mxu0 %v5127_v17 }
 0x40c   :  { %4687 = vmatpush3.msra.mxu0 %v5246_v36 }
 0x40d   :  { %4702 = vmatprep.subr.mxu0 %v5127_v17 }
 0x4c5   :  { %v553_v9 = vpop.f32.mrf.mxu0 }
 0x4c6   :  { %v558_v10 = vrot.slane %v553_v9, 4 }
 0x4c7   :  { %v4668_v11 = vpop.f32.mrf.mxu0 }
 0x4c8   :  { %v560_v12 = vadd.f32 %v558_v10, %v299_v54 }
 0x4ca   :  { %4966 = vtanh.f32 %v560_v12  ;;  %v4389_v14 = vmul.f32 -1.442695, %v560_v12 }
 0x4cc   :  { %4968 = vpow2.f32 %v4389_v14 }
 0x4d7   :  { %v4967_v13 = vpop.eup %4966 }
 0x4d8   :  { %573 = vrot.lane.b32.xlu0 %v4967_v13, %s5129_s2 }
 0x4d9   :  { %v4969_v15 = vpop.eup %4968 }
 0x4da   :  { %v564_v16 = vadd.f32 1.0, %v4969_v15 }
 0x4dc   :  { %4970 = vrcp.f32 %v564_v16 }
 0x4e9   :  { %v4971_v19 = vpop.eup %4970 }
 0x4ea   :  { %v571_v23 = vmul.f32 %v4971_v19, %v569_v22 }
 0x54a   :  { %v574_v20 = vpop.permute.xlu0 %573 }
 0x54b   :  { %v576_v21 = vmul.f32 %v4971_v19, %v574_v20 }
 0x54d   :  { %578 = vrot.lane.b32.xlu1 %v576_v21, %s5130_s5 }
 0x5bf   :  { %v579_v24 = vpop.permute.xlu1 %578 }
 0x5c0   :  { %v581_v25 = vadd.f32 %v579_v24, %v571_v23 }
 0x5c2   :  { %4972 = vtanh.f32 %v581_v25  ;;  %v730_v46 = vrot.slane %v581_v25, 4 }
 0x5cf   :  { %v4973_v26 = vpop.eup %4972 }
 0x5d0   :  { %584 = vrot.lane.b32.xlu0 %v4973_v26, %s5129_s2 }
 0x642   :  { %v585_v27 = vpop.permute.xlu0 %584 }
 0x643   :  { %v5314_v28 = vmul.f32 %v4971_v19, %v585_v27 }
 0x645   :  { %v646_v29 = vrot.slane %v5314_v28, 4 }
 0x647   :  { %647 = vrot.lane.b32.xlu1 %v646_v29, %s5130_s5 }
 0x6b9   :  { %v648_v30 = vpop.permute.xlu1 %647 }
 0x6ba   :  { %4678 = vmatmul.mubr.msk.f32.vlgmr.msra.gmra.mxu1 %vm213_vm8, %v648_v30 }
 0x6bb   :  { %4692 = vmatpush3.msra.mxu1 %v5226_v33  ;;  %4699 = vmatprep.mubr.msk.f32.mxu1 %vm5128_vm7, %v5127_v17 }
 0x6bc   :  { %4693 = vmatprep.subr.mxu1 %v5127_v17 }
 0x6bd   :  { %4694 = vmatpush3.msra.mxu1 %v5233_v34 }
 0x6be   :  { %4695 = vmatprep.subr.mxu1 %v5127_v17 }
 0x6bf   :  { %4696 = vmatpush3.msra.mxu1 %v5240_v35 }
 0x6c0   :  { %4697 = vmatprep.subr.mxu1 %v5127_v17 }
 0x6c1   :  { %4698 = vmatpush3.msra.mxu1 %v5246_v36 }
 0x6c2   :  { %4713 = vmatprep.subr.mxu1 %v5127_v17 }
 0x77a   :  { %v717_v31 = vpop.f32.mrf.mxu1 }
 0x77b   :  { %v721_v32 = vadd.f32 %v717_v31, %v5283_v45 }
 0x77c   :  { %v4679_v37 = vpop.f32.mrf.mxu1 }
 0x77d   :  { %4974 = vtanh.f32 %v721_v32  ;;  %v4391_v39 = vmul.f32 -1.442695, %v721_v32 }
 0x77f   :  { %4976 = vpow2.f32 %v4391_v39 }
 0x78a   :  { %v4975_v38 = vpop.eup %4974 }
 0x78b   :  { %734 = vrot.lane.b32.xlu0 %v4975_v38, %s5129_s2 }
 0x78c   :  { %v4977_v40 = vpop.eup %4976 }
 0x78d   :  { %v725_v41 = vadd.f32 1.0, %v4977_v40 }
 0x78f   :  { %4978 = vrcp.f32 %v725_v41 }
 0x79c   :  { %v4979_v42 = vpop.eup %4978 }
 0x79d   :  { %v732_v47 = vmul.f32 %v4979_v42, %v730_v46 }
 0x7fd   :  { %v735_v43 = vpop.permute.xlu0 %734 }
 0x7fe   :  { %v737_v44 = vmul.f32 %v4979_v42, %v735_v43 }
 0x800   :  { %739 = vrot.lane.b32.xlu1 %v737_v44, %s5130_s5 }
 0x872   :  { %v740_v49 = vpop.permute.xlu1 %739 }
 0x873   :  { %v742_v51 = vadd.f32 %v740_v49, %v732_v47 }
 0x875   :  { %4980 = vtanh.f32 %v742_v51  ;;  %v892_v5 = vrot.slane %v742_v51, 4 }
 0x882   :  { %v4981_v53 = vpop.eup %4980 }
 0x883   :  { %745 = vrot.lane.b32.xlu0 %v4981_v53, %s5129_s2 }
 0x8f5   :  { %v746_v54 = vpop.permute.xlu0 %745 }
 0x8f6   :  { %v5333_v56 = vmul.f32 %v4979_v42, %v746_v54 }
 0x8f8   :  { %806 = vrot.lane.b32.xlu1 %v5333_v56, %s5130_s5 }
 0x96a   :  { %v807_v57 = vpop.permute.xlu1 %806 }
 0x96b   :  { %4689 = vmatmul.mubr.msk.f32.vlgmr.msra.gmra.mxu0 %vm213_vm8, %v807_v57 }
 0x96c   :  { %4703 = vmatpush3.msra.mxu0 %v5226_v33  ;;  %4710 = vmatprep.mubr.msk.f32.mxu0 %vm5128_vm7, %v5127_v17 }
 0x96d   :  { %4704 = vmatprep.subr.mxu0 %v5127_v17 }
 0x96e   :  { %4705 = vmatpush3.msra.mxu0 %v5233_v34 }
 0x96f   :  { %4706 = vmatprep.subr.mxu0 %v5127_v17 }
 0x970   :  { %4707 = vmatpush3.msra.mxu0 %v5240_v35 }
 0x971   :  { %4708 = vmatprep.subr.mxu0 %v5127_v17 }
 0x972   :  { %4709 = vmatpush3.msra.mxu0 %v5246_v36 }
 0x973   :  { %4724 = vmatprep.subr.mxu0 %v5127_v17 }
 0xa2b   :  { %v876_v58 = vpop.f32.mrf.mxu0 }
 0xa2c   :  { %v881_v59 = vrot.slane %v876_v58, 4 }
 0xa2d   :  { %v4690_v60 = vpop.f32.mrf.mxu0 }
 0xa2e   :  { %v883_v61 = vadd.f32 %v881_v59, %v5283_v45 }
 0xa30   :  { %4982 = vtanh.f32 %v883_v61  ;;  %v4393_v63 = vmul.f32 -1.442695, %v883_v61 }
 0xa32   :  { %4984 = vpow2.f32 %v4393_v63 }
 0xa3d   :  { %v4983_v62 = vpop.eup %4982 }
 0xa3e   :  { %896 = vrot.lane.b32.xlu0 %v4983_v62, %s5129_s2 }
 0xa3f   :  { %v4985_v0 = vpop.eup %4984 }
 0xa40   :  { %v887_v1 = vadd.f32 1.0, %v4985_v0 }
 0xa42   :  { %4986 = vrcp.f32 %v887_v1 }
 0xa4f   :  { %v4987_v2 = vpop.eup %4986 }
 0xa50   :  { %v894_v6 = vmul.f32 %v4987_v2, %v892_v5 }
 0xab0   :  { %v897_v3 = vpop.permute.xlu0 %896 }
 0xab1   :  { %v899_v4 = vmul.f32 %v4987_v2, %v897_v3 }
 0xab3   :  { %901 = vrot.lane.b32.xlu1 %v899_v4, %s5130_s5 }
 0xb25   :  { %v902_v8 = vpop.permute.xlu1 %901 }
 0xb26   :  { %v904_v9 = vadd.f32 %v902_v8, %v894_v6 }
 0xb28   :  { %4988 = vtanh.f32 %v904_v9  ;;  %v1053_v26 = vrot.slane %v904_v9, 4 }
 0xb35   :  { %v4989_v45 = vpop.eup %4988 }
 0xb36   :  { %907 = vrot.lane.b32.xlu0 %v4989_v45, %s5129_s2 }
 0xba8   :  { %v908_v10 = vpop.permute.xlu0 %907 }
 0xba9   :  { %v5352_v11 = vmul.f32 %v4987_v2, %v908_v10 }
 0xbab   :  { %v969_v12 = vrot.slane %v5352_v11, 4 }
 0xbad   :  { %970 = vrot.lane.b32.xlu1 %v969_v12, %s5130_s5 }
 0xc1f   :  { %v971_v13 = vpop.permute.xlu1 %970 }
 0xc20   :  { %4700 = vmatmul.mubr.msk.f32.vlgmr.msra.gmra.mxu1 %vm213_vm8, %v971_v13 }
 0xc21   :  { %4714 = vmatpush3.msra.mxu1 %v5226_v33  ;;  %4721 = vmatprep.mubr.msk.f32.mxu1 %vm5128_vm7, %v5127_v17 }
 0xc22   :  { %4715 = vmatprep.subr.mxu1 %v5127_v17 }
 0xc23   :  { %4716 = vmatpush3.msra.mxu1 %v5233_v34 }
 0xc24   :  { %4717 = vmatprep.subr.mxu1 %v5127_v17 }
 0xc25   :  { %4718 = vmatpush3.msra.mxu1 %v5240_v35 }
 0xc26   :  { %4719 = vmatprep.subr.mxu1 %v5127_v17 }
 0xc27   :  { %4720 = vmatpush3.msra.mxu1 %v5246_v36 }
 0xc28   :  { %4735 = vmatprep.subr.mxu1 %v5127_v17 }
 0xce0   :  { %v1040_v14 = vpop.f32.mrf.mxu1 }
 0xce1   :  { %v1044_v15 = vadd.f32 %v1040_v14, %v5287_v50 }
 0xce2   :  { %v4701_v16 = vpop.f32.mrf.mxu1 }
 0xce3   :  { %4990 = vtanh.f32 %v1044_v15  ;;  %v4395_v20 = vmul.f32 -1.442695, %v1044_v15 }
 0xce5   :  { %4992 = vpow2.f32 %v4395_v20 }
 0xcf0   :  { %v4991_v19 = vpop.eup %4990 }
 0xcf1   :  { %1057 = vrot.lane.b32.xlu0 %v4991_v19, %s5129_s2 }
 0xcf2   :  { %v4993_v21 = vpop.eup %4992 }
 0xcf3   :  { %v1048_v22 = vadd.f32 1.0, %v4993_v21 }
 0xcf5   :  { %4994 = vrcp.f32 %v1048_v22 }
 0xd02   :  { %v4995_v23 = vpop.eup %4994 }
 0xd03   :  { %v1055_v27 = vmul.f32 %v4995_v23, %v1053_v26 }
 0xd63   :  { %v1058_v24 = vpop.permute.xlu0 %1057 }
 0xd64   :  { %v1060_v25 = vmul.f32 %v4995_v23, %v1058_v24 }
 0xd66   :  { %1062 = vrot.lane.b32.xlu1 %v1060_v25, %s5130_s5 }
 0xdd8   :  { %v1063_v29 = vpop.permute.xlu1 %1062 }
 0xdd9   :  { %v1065_v30 = vadd.f32 %v1063_v29, %v1055_v27 }
 0xddb   :  { %4996 = vtanh.f32 %v1065_v30  ;;  %v1215_v54 = vrot.slane %v1065_v30, 4 }
 0xde8   :  { %v4997_v31 = vpop.eup %4996 }
 0xde9   :  { %1068 = vrot.lane.b32.xlu0 %v4997_v31, %s5129_s2 }
 0xe5b   :  { %v1069_v32 = vpop.permute.xlu0 %1068 }
 0xe5c   :  { %v5371_v37 = vmul.f32 %v4995_v23, %v1069_v32 }
 0xe5e   :  { %1129 = vrot.lane.b32.xlu1 %v5371_v37, %s5130_s5 }
 0xed0   :  { %v1130_v38 = vpop.permute.xlu1 %1129 }
 0xed1   :  { %4711 = vmatmul.mubr.msk.f32.vlgmr.msra.gmra.mxu0 %vm213_vm8, %v1130_v38 }
 0xed2   :  { %4725 = vmatpush3.msra.mxu0 %v5226_v33  ;;  %4732 = vmatprep.mubr.msk.f32.mxu0 %vm5128_vm7, %v5127_v17 }
 0xed3   :  { %4726 = vmatprep.subr.mxu0 %v5127_v17 }
 0xed4   :  { %4727 = vmatpush3.msra.mxu0 %v5233_v34 }
 0xed5   :  { %4728 = vmatprep.subr.mxu0 %v5127_v17 }
 0xed6   :  { %4729 = vmatpush3.msra.mxu0 %v5240_v35 }
 0xed7   :  { %4730 = vmatprep.subr.mxu0 %v5127_v17 }
 0xed8   :  { %4731 = vmatpush3.msra.mxu0 %v5246_v36 }
 0xed9   :  { %4746 = vmatprep.subr.mxu0 %v5127_v17 }
 0xf91   :  { %v1199_v39 = vpop.f32.mrf.mxu0 }
 0xf92   :  { %v1204_v40 = vrot.slane %v1199_v39, 4 }
 0xf93   :  { %v4712_v41 = vpop.f32.mrf.mxu0 }
 0xf94   :  { %v1206_v42 = vadd.f32 %v1204_v40, %v5287_v50 }
 0xf96   :  { %4998 = vtanh.f32 %v1206_v42  ;;  %v4397_v44 = vmul.f32 -1.442695, %v1206_v42 }
 0xf98   :  { %5000 = vpow2.f32 %v4397_v44 }
 0xfa3   :  { %v4999_v43 = vpop.eup %4998 }
 0xfa4   :  { %1219 = vrot.lane.b32.xlu0 %v4999_v43, %s5129_s2 }
 0xfa5   :  { %v5001_v46 = vpop.eup %5000 }
 0xfa6   :  { %v1210_v47 = vadd.f32 1.0, %v5001_v46 }
 0xfa8   :  { %5002 = vrcp.f32 %v1210_v47 }
 0xfb5   :  { %v5003_v49 = vpop.eup %5002 }
 0xfb6   :  { %v1217_v57 = vmul.f32 %v5003_v49, %v1215_v54 }
0x1016   :  { %v1220_v51 = vpop.permute.xlu0 %1219 }
0x1017   :  { %v1222_v53 = vmul.f32 %v5003_v49, %v1220_v51 }
0x1019   :  { %1224 = vrot.lane.b32.xlu1 %v1222_v53, %s5130_s5 }
0x108b   :  { %v1225_v58 = vpop.permute.xlu1 %1224 }
0x108c   :  { %v1227_v59 = vadd.f32 %v1225_v58, %v1217_v57 }
0x108e   :  { %5004 = vtanh.f32 %v1227_v59  ;;  %v1376_v10 = vrot.slane %v1227_v59, 4 }
0x109b   :  { %v5005_v50 = vpop.eup %5004 }
0x109c   :  { %1230 = vrot.lane.b32.xlu0 %v5005_v50, %s5129_s2 }
0x110e   :  { %v1231_v60 = vpop.permute.xlu0 %1230 }
0x110f   :  { %v5390_v61 = vmul.f32 %v5003_v49, %v1231_v60 }
0x1111   :  { %v1292_v62 = vrot.slane %v5390_v61, 4 }
0x1113   :  { %1293 = vrot.lane.b32.xlu1 %v1292_v62, %s5130_s5 }
0x1185   :  { %v1294_v63 = vpop.permute.xlu1 %1293 }
0x1186   :  { %4722 = vmatmul.mubr.msk.f32.vlgmr.msra.gmra.mxu1 %vm213_vm8, %v1294_v63 }
0x1187   :  { %4736 = vmatpush3.msra.mxu1 %v5226_v33  ;;  %4743 = vmatprep.mubr.msk.f32.mxu1 %vm5128_vm7, %v5127_v17 }
0x1188   :  { %4737 = vmatprep.subr.mxu1 %v5127_v17 }
0x1189   :  { %4738 = vmatpush3.msra.mxu1 %v5233_v34 }
0x118a   :  { %4739 = vmatprep.subr.mxu1 %v5127_v17 }
0x118b   :  { %4740 = vmatpush3.msra.mxu1 %v5240_v35 }
0x118c   :  { %4741 = vmatprep.subr.mxu1 %v5127_v17 }
0x118d   :  { %4742 = vmatpush3.msra.mxu1 %v5246_v36 }
0x118e   :  { %4757 = vmatprep.subr.mxu1 %v5127_v17 }
0x1246   :  { %v1363_v0 = vpop.f32.mrf.mxu1 }
0x1247   :  { %v1367_v1 = vadd.f32 %v1363_v0, %v5285_v48 }
0x1248   :  { %v4723_v2 = vpop.f32.mrf.mxu1 }
0x1249   :  { %5006 = vtanh.f32 %v1367_v1  ;;  %v4399_v4 = vmul.f32 -1.442695, %v1367_v1 }
0x124b   :  { %5008 = vpow2.f32 %v4399_v4 }
0x1256   :  { %v5007_v3 = vpop.eup %5006 }
0x1257   :  { %1380 = vrot.lane.b32.xlu0 %v5007_v3, %s5129_s2 }
0x1258   :  { %v5009_v5 = vpop.eup %5008 }
0x1259   :  { %v1371_v6 = vadd.f32 1.0, %v5009_v5 }
0x125b   :  { %5010 = vrcp.f32 %v1371_v6 }
0x1268   :  { %v5011_v8 = vpop.eup %5010 }
0x1269   :  { %v1378_v12 = vmul.f32 %v5011_v8, %v1376_v10 }
0x12c9   :  { %v1381_v9 = vpop.permute.xlu0 %1380 }
0x12ca   :  { %v1383_v45 = vmul.f32 %v5011_v8, %v1381_v9 }
0x12cc   :  { %1385 = vrot.lane.b32.xlu1 %v1383_v45, %s5130_s5 }
0x133e   :  { %v1386_v13 = vpop.permute.xlu1 %1385 }
0x133f   :  { %v1388_v14 = vadd.f32 %v1386_v13, %v1378_v12 }
0x1341   :  { %5012 = vtanh.f32 %v1388_v14  ;;  %v1538_v38 = vrot.slane %v1388_v14, 4 }
0x134e   :  { %v5013_v15 = vpop.eup %5012 }
0x134f   :  { %1391 = vrot.lane.b32.xlu0 %v5013_v15, %s5129_s2 }
0x13c1   :  { %v1392_v16 = vpop.permute.xlu0 %1391 }
0x13c2   :  { %v5409_v19 = vmul.f32 %v5011_v8, %v1392_v16 }
0x13c4   :  { %1452 = vrot.lane.b32.xlu1 %v5409_v19, %s5130_s5 }
0x1436   :  { %v1453_v20 = vpop.permute.xlu1 %1452 }
0x1437   :  { %4733 = vmatmul.mubr.msk.f32.vlgmr.msra.gmra.mxu0 %vm213_vm8, %v1453_v20 }
0x1438   :  { %4747 = vmatpush3.msra.mxu0 %v5226_v33  ;;  %4754 = vmatprep.mubr.msk.f32.mxu0 %vm5128_vm7, %v5127_v17 }
0x1439   :  { %4748 = vmatprep.subr.mxu0 %v5127_v17 }
0x143a   :  { %4749 = vmatpush3.msra.mxu0 %v5233_v34 }
0x143b   :  { %4750 = vmatprep.subr.mxu0 %v5127_v17 }
0x143c   :  { %4751 = vmatpush3.msra.mxu0 %v5240_v35 }
0x143d   :  { %4752 = vmatprep.subr.mxu0 %v5127_v17 }
0x143e   :  { %4753 = vmatpush3.msra.mxu0 %v5246_v36 }
0x143f   :  { %4768 = vmatprep.subr.mxu0 %v5127_v17 }
0x14f7   :  { %v1522_v21 = vpop.f32.mrf.mxu0 }
0x14f8   :  { %v1527_v22 = vrot.slane %v1522_v21, 4  ;;  %v5131_v21 = vmov 1966171168  }
0x14f9   :  { %v4734_v23 = vpop.f32.mrf.mxu0 }
0x14fa   :  { %v1529_v24 = vadd.f32 %v1527_v22, %v5285_v48  ;;  %v427_v22 = vunpack.c.l.s4 %v5131_v21 }
0x14fc   :  { %5014 = vtanh.f32 %v1529_v24  ;;  %v4401_v26 = vmul.f32 -1.442695, %v1529_v24  ;;  %v428_v23 = vunpack.c.0.s8 %v427_v22  ;;  %v430_v24 = vshrl.u32 %v50_v18, 7 }
0x14fe   :  { %5016 = vpow2.f32 %v4401_v26 }
0x1509   :  { %v5015_v25 = vpop.eup %5014 }
0x150a   :  { %1542 = vrot.lane.b32.xlu0 %v5015_v25, %s5129_s2  ;;  %v5469_v25 = vsub.s32 %v428_v23, %v430_v24 }
0x150b   :  { %v5017_v27 = vpop.eup %5016 }
0x150c   :  { %v1533_v29 = vadd.f32 1.0, %v5017_v27  ;;  %v5473_v26 = vrot.slane %v5296_v7, %v5469_v25  ;;  %v589_v27 = vcombine.high %v5314_v28, %v5314_v28  ;;  %v5492_v7 = vrot.slane %v5333_v56, %v5469_v25 }
0x150d   :  { %v912_v28 = vcombine.high %v5352_v11, %v5352_v11  ;;  %v5515_v11 = vrot.slane %v5371_v37, %v5469_v25 }
0x150e   :  { %5018 = vrcp.f32 %v1533_v29  ;;  %v5486_v18 = vrot.slane %v589_v27, %v5469_v25 }
0x150f   :  { %v1080_v21 = vcombine.high %v5515_v11, %v5515_v11 }
0x1511   :  { %v5620_v27 = vrot.slane %v1080_v21, %v5469_v25  ;;  %v5705_v21 = vld [vmem:[%s6278_s3 + $0x20] sm:$0xff] }
0x151b   :  { %v5019_v30 = vpop.eup %5018 }
0x151c   :  { %v1540_v39 = vmul.f32 %v5019_v30, %v1538_v38 }
0x157c   :  { %v1543_v31 = vpop.permute.xlu0 %1542 }
0x157d   :  { %v1545_v32 = vmul.f32 %v5019_v30, %v1543_v31  ;;  %v5479_v31 = vsub.s32 0, %v430_v24 }
0x157f   :  { %1547 = vrot.lane.b32.xlu1 %v1545_v32, %s5130_s5  ;;  %v5483_v32 = vrot.slane %v5473_v26, %v5469_v25 }
0x15f1   :  { %v1548_v40 = vpop.permute.xlu1 %1547 }
0x15f2   :  { %v1550_v41 = vadd.f32 %v1548_v40, %v1540_v39  ;;  %v453_v39 = vrot.slane %v5483_v32, %v5479_v31  ;;  %v5500_v40 = vrot.slane %v5486_v18, %v5469_v25 }
0x15f4   :  { %5020 = vtanh.f32 %v1550_v41  ;;  %v1699_v62 = vrot.slane %v1550_v41, 4  ;;  %v5505_v41 = vrot.slane %v5492_v7, %v5469_v25  ;;  %v617_v56 = vrot.slane %v5500_v40, %v5479_v31 }
0x1601   :  { %v5021_v48 = vpop.eup %5020 }
0x1602   :  { %1553 = vrot.lane.b32.xlu0 %v5021_v48, %s5129_s2  ;;  %v5508_v48 = vrot.slane %v912_v28, %v5469_v25  ;;  %v28_v28 = vld [vmem:[%s6278_s3 + $0x10] sm:$0xff] }
0x1674   :  { %v1554_v42 = vpop.permute.xlu0 %1553 }
0x1675   :  { %v5428_v43 = vmul.f32 %v5019_v30, %v1554_v42  ;;  %v1235_v42 = vcombine.high %v5390_v61, %v5390_v61  ;;  %v5538_v61 = vrot.slane %v5409_v19, %v5469_v25 }
0x1677   :  { %v1615_v44 = vrot.slane %v5428_v43, 4 }
0x1679   :  { %1616 = vrot.lane.b32.xlu1 %v1615_v44, %s5130_s5  ;;  %v777_v44 = vrot.slane %v5505_v41, %v5479_v31 }
0x16eb   :  { %v1617_v46 = vpop.permute.xlu1 %1616 }
0x16ec   :  { %4744 = vmatmul.mubr.msk.f32.vlgmr.msra.gmra.mxu1 %vm213_vm8, %v1617_v46  ;;  %v5523_v46 = vrot.slane %v5508_v48, %v5469_v25 }
0x16ed   :  { %4758 = vmatpush3.msra.mxu1 %v5226_v33  ;;  %4765 = vmatprep.mubr.msk.f32.mxu1 %vm5128_vm7, %v5127_v17 }
0x16ee   :  { %4759 = vmatprep.subr.mxu1 %v5127_v17  ;;  %v940_v37 = vrot.slane %v5523_v46, %v5479_v31 }
0x16ef   :  { %4760 = vmatpush3.msra.mxu1 %v5233_v34 }
0x16f0   :  { %4761 = vmatprep.subr.mxu1 %v5127_v17 }
0x16f1   :  { %4762 = vmatpush3.msra.mxu1 %v5240_v35 }
0x16f2   :  { %4763 = vmatprep.subr.mxu1 %v5127_v17 }
0x16f3   :  { %4764 = vmatpush3.msra.mxu1 %v5246_v36 }
0x17ac   :  { %v1686_v47 = vpop.f32.mrf.mxu1 }
0x17ad   :  { %v1690_v49 = vadd.f32 %v1686_v47, %v5291_v55  ;;  %v5528_v47 = vrot.slane %v5515_v11, %v5469_v25 }
0x17ae   :  { %v4745_v51 = vpop.f32.mrf.mxu1 }
0x17af   :  { %5022 = vtanh.f32 %v1690_v49  ;;  %v4403_v54 = vmul.f32 -1.442695, %v1690_v49  ;;  %v5531_v49 = vrot.slane %v1235_v42, %v5469_v25  ;;  %v1558_v51 = vcombine.high %v5428_v43, %v5428_v43  ;;  %v26_v42 = vld [vmem:[%s6278_s3] sm:$0xff] }
0x17b1   :  { %5024 = vpow2.f32 %v4403_v54  ;;  %v5546_v54 = vrot.slane %v5531_v49, %v5469_v25  ;;  %v1243_v24 = vcombine.high %v5531_v49, %v5531_v49 }
0x17b3   :  { %v1263_v19 = vrot.slane %v5546_v54, %v5479_v31 }
0x17bc   :  { %v5023_v53 = vpop.eup %5022 }
0x17bd   :  { %1703 = vrot.lane.b32.xlu0 %v5023_v53, %s5129_s2  ;;  %v1100_v53 = vrot.slane %v5528_v47, %v5479_v31 }
0x17be   :  { %v5025_v57 = vpop.eup %5024 }
0x17bf   :  { %v1694_v58 = vadd.f32 1.0, %v5025_v57  ;;  %v5551_v57 = vrot.slane %v5538_v61, %v5469_v25 }
0x17c1   :  { %5026 = vrcp.f32 %v1694_v58  ;;  %v5554_v58 = vrot.slane %v1558_v51, %v5469_v25  ;;  %v1423_v43 = vrot.slane %v5551_v57, %v5479_v31 }
0x17ce   :  { %v5027_v59 = vpop.eup %5026 }
0x17cf   :  { %v1701_v63 = vmul.f32 %v5027_v59, %v1699_v62 }
0x182f   :  { %v1704_v50 = vpop.permute.xlu0 %1703 }
0x1830   :  { %v1706_v60 = vmul.f32 %v5027_v59, %v1704_v50 }
0x1832   :  { %1708 = vrot.lane.b32.xlu1 %v1706_v60, %s5130_s5 }
0x18a4   :  { %v1709_v0 = vpop.permute.xlu1 %1708 }
0x18a5   :  { %v1711_v1 = vadd.f32 %v1709_v0, %v1701_v63 }
0x18a7   :  { %5028 = vtanh.f32 %v1711_v1 }
0x18b4   :  { %v5029_v2 = vpop.eup %5028 }
0x18b5   :  { %1714 = vrot.lane.b32.xlu0 %v5029_v2, %s5129_s2 }
0x1927   :  { %v1715_v3 = vpop.permute.xlu0 %1714 }
0x1928   :  { %v5446_v4 = vmul.f32 %v5027_v59, %v1715_v3  ;;  %v5563_v59 = vrot.slane %v5554_v58, %v5469_v25 }
0x192a   :  { %1775 = vrot.lane.b32.xlu1 %v5446_v4, %s5130_s5  ;;  %v1586_v50 = vrot.slane %v5563_v59, %v5479_v31 }
0x199c   :  { %v1776_v5 = vpop.permute.xlu1 %1775 }
0x199d   :  { %4755 = vmatmul.mubr.msk.f32.vlgmr.msra.gmra.mxu0 %vm213_vm8, %v1776_v5 }
0x199e   :  { %4769 = vmatpush3.msra.mxu0 %v5226_v33  ;;  %4776 = vmatprep.mubr.msk.f32.mxu0 %vm5128_vm7, %v5127_v17 }
0x199f   :  { %4770 = vmatprep.subr.mxu0 %v5127_v17 }
0x19a0   :  { %4771 = vmatpush3.msra.mxu0 %v5233_v34 }
0x19a1   :  { %4772 = vmatprep.subr.mxu0 %v5127_v17 }
0x19a2   :  { %4773 = vmatpush3.msra.mxu0 %v5240_v35 }
0x19a3   :  { %4774 = vmatprep.subr.mxu0 %v5127_v17 }
0x19a4   :  { %4775 = vmatpush3.msra.mxu0 %v5246_v36  ;;  %v1861_v36 = vrot.slane %v1711_v1, 4 }
0x19a5   :  { %4790 = vmatprep.subr.mxu0 %v5127_v17 }
0x1a5d   :  { %v1845_v6 = vpop.f32.mrf.mxu0 }
0x1a5e   :  { %v1850_v8 = vrot.slane %v1845_v6, 4 }
0x1a5f   :  { %v4756_v33 = vpop.f32.mrf.mxu0 }
0x1a60   :  { %v1852_v9 = vadd.f32 %v1850_v8, %v5291_v55 }
0x1a62   :  { %5030 = vtanh.f32 %v1852_v9  ;;  %v4405_v34 = vmul.f32 -1.442695, %v1852_v9 }
0x1a64   :  { %5032 = vpow2.f32 %v4405_v34  ;;  %v433_v34 = vcombine.high %v5473_v26, %v5473_v26 }
0x1a6f   :  { %v5031_v45 = vpop.eup %5030 }
0x1a70   :  { %1865 = vrot.lane.b32.xlu0 %v5031_v45, %s5129_s2 }
0x1a71   :  { %v5033_v10 = vpop.eup %5032 }
0x1a72   :  { %v1856_v12 = vadd.f32 1.0, %v5033_v10  ;;  %v597_v10 = vcombine.high %v5486_v18, %v5486_v18  ;;  %v1104_v18 = vrot.slane %v5620_v27, %v5479_v31 }
0x1a74   :  { %5034 = vrcp.f32 %v1856_v12  ;;  %v5588_v12 = vrot.slane %v433_v34, %v5469_v25 }
0x1a81   :  { %v5035_v35 = vpop.eup %5034 }
0x1a82   :  { %v1863_v15 = vmul.f32 %v5035_v35, %v1861_v36  ;;  %v5596_v36 = vrot.slane %v597_v10, %v5469_v25 }
0x1ae2   :  { %v1866_v13 = vpop.permute.xlu0 %1865 }
0x1ae3   :  { %v1868_v14 = vmul.f32 %v5035_v35, %v1866_v13  ;;  %v757_v13 = vcombine.high %v5492_v7, %v5492_v7  ;;  %v29_v7 = vld [vmem:[%s6278_s3 + $0x18] sm:$0xff] }
0x1ae4   :  { %4779 = vmatprep.subr.mxu1 %v29_v7 }
0x1ae5   :  { %1870 = vrot.lane.b32.xlu1 %v1868_v14, %s5130_s5  ;;  %v457_v14 = vrot.slane %v5588_v12, %v5479_v31 }
0x1b57   :  { %v1871_v16 = vpop.permute.xlu1 %1870 }
0x1b58   :  { %v5464_v20 = vadd.f32 %v1871_v16, %v1863_v15  ;;  %v920_v15 = vcombine.high %v5508_v48, %v5508_v48  ;;  %v621_v16 = vrot.slane %v5596_v36, %v5479_v31  ;;  %v1566_v48 = vcombine.high %v5554_v58, %v5554_v58 }
0x1b5a   :  { %5036 = vtanh.f32 %v5464_v20  ;;  %v5612_v23 = vrot.slane %v920_v15, %v5469_v25  ;;  %v5654_v49 = vrot.slane %v1566_v48, %v5469_v25  ;;  %v5698_v15 = vld [vmem:[%s6278_s3 + $0x28] sm:$0xff] }
0x1b5c   :  { %v944_v26 = vrot.slane %v5612_v23, %v5479_v31 }
0x1b67   :  { %v5037_v55 = vpop.eup %5036 }
0x1b68   :  { %1876 = vrot.lane.b32.xlu0 %v5037_v55, %s5129_s2  ;;  %v5604_v55 = vrot.slane %v757_v13, %v5469_v25 }
0x1b6a   :  { %v781_v22 = vrot.slane %v5604_v55, %v5479_v31 }
0x1bda   :  { %v1877_v29 = vpop.permute.xlu0 %1876 }
0x1bdb   :  { %v5477_v30 = vmul.f32 %v5035_v35, %v1877_v29  ;;  %v1403_v29 = vcombine.high %v5538_v61, %v5538_v61 }
0x1bdd   :  { %v1938_v38 = vrot.slane %v5477_v30, 4  ;;  %v5645_v11 = vrot.slane %v1403_v29, %v5469_v25 }
0x1bdf   :  { %1939 = vrot.lane.b32.xlu1 %v1938_v38, %s5130_s5  ;;  %v5628_v38 = vrot.slane %v1243_v24, %v5469_v25 }
0x1be3   :  { %466 = vrot.lane.b32.xlu1 %v453_v39, %s5130_s5  ;;  %v27_v39 = vld [vmem:[%s6278_s3 + $0x8] sm:$0xff] }
0x1be7   :  { %630 = vrot.lane.b32.xlu1 %v617_v56, %s5130_s5  ;;  %v1267_v56 = vrot.slane %v5628_v38, %v5479_v31 }
0x1beb   :  { %790 = vrot.lane.b32.xlu1 %v777_v44, %s5130_s5  ;;  %v1427_v44 = vrot.slane %v5645_v11, %v5479_v31 }
0x1bef   :  { %953 = vrot.lane.b32.xlu1 %v940_v37, %s5130_s5  ;;  %v1590_v37 = vrot.slane %v5654_v49, %v5479_v31 }
0x1bf3   :  { %1113 = vrot.lane.b32.xlu1 %v1100_v53, %s5130_s5 }
0x1bf7   :  { %1276 = vrot.lane.b32.xlu1 %v1263_v19, %s5130_s5 }
0x1bfb   :  { %1436 = vrot.lane.b32.xlu1 %v1423_v43, %s5130_s5 }
0x1bff   :  { %1599 = vrot.lane.b32.xlu1 %v1586_v50, %s5130_s5 }
0x1c51   :  { %v1940_v60 = vpop.permute.xlu1 %1939 }
0x1c52   :  { %4766 = vmatmul.mubr.msk.f32.vlgmr.msra.gmra.mxu1 %vm213_vm8, %v1940_v60 }
0x1c53   :  { %4780 = vmatpush3.msra.mxu1 %v29_v7 }
0x1c54   :  { %4781 = vmatprep.subr.mxu1 %v28_v28 }
0x1c55   :  { %v467_v62 = vpop.permute.xlu1 %466  ;;  %4782 = vmatpush3.msra.mxu1 %v28_v28 }
0x1c56   :  { %479 = vst.msk [vmem:[#allocation2] sm:$0x1] %vm478_vm9, %v467_v62  ;;  %4783 = vmatprep.subr.mxu1 %v27_v39 }
0x1c57   :  { %4784 = vmatpush3.msra.mxu1 %v27_v39 }
0x1c58   :  { %4785 = vmatprep.subr.mxu1 %v26_v42 }
0x1c59   :  { %v631_v63 = vpop.permute.xlu1 %630  ;;  %4786 = vmatpush3.msra.mxu1 %v26_v42 }
0x1c5a   :  { %642 = vst.msk [vmem:[#allocation2 + $0x1] sm:$0x1] %vm478_vm9, %v631_v63  ;;  %4807 = vmatprep.subr.mxu1 %v5127_v17 }
0x1c5d   :  { %v791_v0 = vpop.permute.xlu1 %790 }
0x1c5e   :  { %802 = vst.msk [vmem:[#allocation2 + $0x2] sm:$0x1] %vm478_vm9, %v791_v0 }
0x1c61   :  { %v954_v1 = vpop.permute.xlu1 %953 }
0x1c62   :  { %965 = vst.msk [vmem:[#allocation2 + $0x3] sm:$0x1] %vm478_vm9, %v954_v1 }
0x1c65   :  { %v1114_v2 = vpop.permute.xlu1 %1113 }
0x1c66   :  { %1125 = vst.msk [vmem:[#allocation2 + $0x4] sm:$0x1] %vm478_vm9, %v1114_v2 }
0x1c69   :  { %v1277_v3 = vpop.permute.xlu1 %1276 }
0x1c6a   :  { %1288 = vst.msk [vmem:[#allocation2 + $0x5] sm:$0x1] %vm478_vm9, %v1277_v3 }
0x1c6d   :  { %v1437_v5 = vpop.permute.xlu1 %1436 }
0x1c6e   :  { %1448 = vst.msk [vmem:[#allocation2 + $0x6] sm:$0x1] %vm478_vm9, %v1437_v5 }
0x1c71   :  { %v1600_v6 = vpop.permute.xlu1 %1599 }
0x1c72   :  { %1611 = vst.msk [vmem:[#allocation2 + $0x7] sm:$0x1] %vm478_vm9, %v1600_v6 }
0x1c79   :  { %v5578_v8 = vld [vmem:[#allocation2] sm:$0xff] }
0x1c7a   :  { %4787 = vmatprep.mubr.msk.f32.mxu1 %vm213_vm8, %v5578_v8  ;;  %v2267_v2 = vsel %vm213_vm8, %v5578_v8, 0.0 }
0x1c7b   :  { %v2268_v5 = vrot.slane %v2267_v2, 4 }
0x1d12   :  { %v2009_v33 = vpop.f32.mrf.mxu1 }
0x1d13   :  { %v2013_v9 = vadd.f32 %v2009_v33, %v5289_v52  ;;  %v2269_v33 = vadd.f32 %v2268_v5, %v2267_v2 }
0x1d14   :  { %v4767_v45 = vpop.f32.mrf.mxu1 }
0x1d15   :  { %5038 = vtanh.f32 %v2013_v9  ;;  %v4407_v61 = vmul.f32 -1.442695, %v2013_v9  ;;  %v2270_v9 = vrot.slane %v2269_v33, 2  ;;  %v5678_v45 = vld [vmem:[%s6278_s3 + $0x38] sm:$0xff] }
0x1d17   :  { %5040 = vpow2.f32 %v4407_v61  ;;  %v2271_v13 = vadd.f32 %v2270_v9, %v2269_v33 }
0x1d22   :  { %v5039_v35 = vpop.eup %5038 }
0x1d23   :  { %2026 = vrot.lane.b32.xlu0 %v5039_v35, %s5129_s2  ;;  %v5689_v35 = vld [vmem:[%s6278_s3 + $0x30] sm:$0xff] }
0x1d24   :  { %v5041_v51 = vpop.eup %5040 }
0x1d25   :  { %v2017_v53 = vadd.f32 1.0, %v5041_v51 }
0x1d27   :  { %468 = vrot.lane.b32.xlu0 %v457_v14, %s5130_s5  ;;  %5042 = vrcp.f32 %v2017_v53 }
0x1d2b   :  { %632 = vrot.lane.b32.xlu0 %v621_v16, %s5130_s5 }
0x1d2f   :  { %792 = vrot.lane.b32.xlu0 %v781_v22, %s5130_s5  ;;  %v2272_v22 = vrot.slane %v2271_v13, 1 }
0x1d31   :  { %v2273_v29 = vadd.f32 %v2272_v22, %v2271_v13 }
0x1d33   :  { %955 = vrot.lane.b32.xlu0 %v944_v26, %s5130_s5  ;;  %v5711_v28 = vmul.f32 0.125, %v2273_v29 }
0x1d34   :  { %v5661_v58 = vpop.eup %5042 }
0x1d37   :  { %1115 = vrot.lane.b32.xlu0 %v1104_v18, %s5130_s5 }
0x1d3b   :  { %1278 = vrot.lane.b32.xlu0 %v1267_v56, %s5130_s5  ;;  %v2022_v56 = vrot.slane %v5464_v20, 4 }
0x1d3d   :  { %v2024_v42 = vmul.f32 %v5661_v58, %v2022_v56 }
0x1d3f   :  { %1438 = vrot.lane.b32.xlu0 %v1427_v44, %s5130_s5 }
0x1d43   :  { %1601 = vrot.lane.b32.xlu0 %v1590_v37, %s5130_s5 }
0x1d95   :  { %v2027_v19 = vpop.permute.xlu0 %2026 }
0x1d96   :  { %v2029_v43 = vmul.f32 %v5661_v58, %v2027_v19 }
0x1d98   :  { %2031 = vrot.lane.b32.xlu1 %v2029_v43, %s5130_s5 }
0x1d99   :  { %v469_v50 = vpop.permute.xlu0 %468 }
0x1d9a   :  { %480 = vst.msk [vmem:[#allocation2 + $0x10] sm:$0x1] %vm478_vm9, %v469_v50 }
0x1d9d   :  { %v633_v60 = vpop.permute.xlu0 %632 }
0x1d9e   :  { %643 = vst.msk [vmem:[#allocation2 + $0x11] sm:$0x1] %vm478_vm9, %v633_v60 }
0x1da1   :  { %v793_v62 = vpop.permute.xlu0 %792 }
0x1da2   :  { %803 = vst.msk [vmem:[#allocation2 + $0x12] sm:$0x1] %vm478_vm9, %v793_v62 }
0x1da5   :  { %v956_v63 = vpop.permute.xlu0 %955 }
0x1da6   :  { %966 = vst.msk [vmem:[#allocation2 + $0x13] sm:$0x1] %vm478_vm9, %v956_v63 }
0x1da9   :  { %v1116_v0 = vpop.permute.xlu0 %1115 }
0x1daa   :  { %1126 = vst.msk [vmem:[#allocation2 + $0x14] sm:$0x1] %vm478_vm9, %v1116_v0 }
0x1dad   :  { %v1279_v1 = vpop.permute.xlu0 %1278 }
0x1dae   :  { %1289 = vst.msk [vmem:[#allocation2 + $0x15] sm:$0x1] %vm478_vm9, %v1279_v1 }
0x1db1   :  { %v1439_v3 = vpop.permute.xlu0 %1438 }
0x1db2   :  { %1449 = vst.msk [vmem:[#allocation2 + $0x16] sm:$0x1] %vm478_vm9, %v1439_v3 }
0x1db5   :  { %v1602_v6 = vpop.permute.xlu0 %1601 }
0x1db6   :  { %1612 = vst.msk [vmem:[#allocation2 + $0x17] sm:$0x1] %vm478_vm9, %v1602_v6  ;;  %v5747_v6 = vld [vmem:[%s6278_s3 + $0x80] sm:$0x1] }
0x1dbd   :  { %v5680_v34 = vld [vmem:[#allocation2 + $0x10] sm:$0xff] }
0x1dbe   :  { %v2274_v10 = vsel %vm213_vm8, %v5680_v34, 0.0  ;;  %4788 = vmatmul.mubr.msk.f32.vlgmr.msra.gmra.mxu1 %vm213_vm8, %v5680_v34 }
0x1dbf   :  { %v2275_v14 = vrot.slane %v2274_v10, 4  ;;  %4808 = vmatpush3.msra.mxu1 %v5678_v45  ;;  %4815 = vmatprep.mubr.msk.f32.mxu1 %vm5128_vm7, %v5127_v17 }
0x1dc0   :  { %4809 = vmatprep.subr.mxu1 %v5127_v17 }
0x1dc1   :  { %v2276_v16 = vadd.f32 %v2275_v14, %v2274_v10  ;;  %4810 = vmatpush3.msra.mxu1 %v5689_v35 }
0x1dc2   :  { %4811 = vmatprep.subr.mxu1 %v5127_v17 }
0x1dc3   :  { %v2277_v24 = vrot.slane %v2276_v16, 2  ;;  %4812 = vmatpush3.msra.mxu1 %v5698_v15 }
0x1dc4   :  { %4813 = vmatprep.subr.mxu1 %v5127_v17 }
0x1dc5   :  { %4814 = vmatpush3.msra.mxu1 %v5705_v21  ;;  %v2278_v26 = vadd.f32 %v2277_v24, %v2276_v16 }
0x1dc6   :  { %4818 = vmatprep.subr.mxu1 %v5127_v17 }
0x1dc7   :  { %v2279_v18 = vrot.slane %v2278_v26, 1 }
0x1dc9   :  { %v2280_v7 = vadd.f32 %v2279_v18, %v2278_v26 }
0x1dcb   :  { %v5713_v39 = vmul.f32 0.125, %v2280_v7 }
0x1dcd   :  { %v2472_v48 = vsel %vm2471_vm10, %v5713_v39, %v5711_v28 }
0x1dce   :  { %4816 = vmatmul.mubr.msk.f32.vlgmr.msra.gmra.mxu1 %vm213_vm8, %v2472_v48 }
0x1dcf   :  { %4820 = vmatprep.mubr.msk.f32.mxu1 %vm5128_vm7, %v5127_v17 }
0x1e0a   :  { %v2032_v44 = vpop.permute.xlu1 %2031 }
0x1e0b   :  { %v5723_v37 = vadd.f32 %v2032_v44, %v2024_v42  ;;  %v448_v42 = vcombine.high %v5483_v32, %v5483_v32 }
0x1e0d   :  { %5044 = vtanh.f32 %v5723_v37  ;;  %v461_v44 = vrot.slane %v448_v42, %v5479_v31 }
0x1e1a   :  { %v5045_v61 = vpop.eup %5044 }
0x1e1b   :  { %2037 = vrot.lane.b32.xlu0 %v5045_v61, %s5129_s2 }
0x1e7e   :  { %v5727_v51 = vpop.f32.mrf.mxu1 }
0x1e80   :  { %v5729_v53 = vpop.f32.mrf.mxu1 }
0x1e8d   :  { %v2038_v19 = vpop.permute.xlu0 %2037 }
0x1e8e   :  { %v5732_v43 = vmul.f32 %v5661_v58, %v2038_v19  ;;  %v2541_v50 = vpop.f32.mrf.mxu1  ;;  %v935_v19 = vcombine.high %v5523_v46, %v5523_v46  ;;  %v613_v46 = vcombine.high %v5596_v36, %v5596_v36 }
0x1e8f   :  { %v2552_v20 = vrot.slane %v2541_v50, %v5469_v25 }
0x1e90   :  { %v4817_v60 = vpop.f32.mrf.mxu1  ;;  %2098 = vrot.lane.b32.xlu1 %v5732_v43, %s5130_s5  ;;  %v948_v50 = vrot.slane %v935_v19, %v5479_v31 }
0x1e91   :  { %v2553_v62 = vcombine.high %v2552_v20, %v2552_v20  ;;  %v2560_v63 = vrot.slane %v2552_v20, %v5469_v25  ;;  %v1258_v20 = vcombine.high %v5546_v54, %v5546_v54  ;;  %v629_v54 = vrot.slane %v613_v46, %v5479_v31 }
0x1e93   :  { %v2567_v0 = vrot.slane %v2553_v62, %v5469_v25  ;;  %v2571_v1 = vrot.slane %v2560_v63, %v5479_v31  ;;  %v1271_v32 = vrot.slane %v1258_v20, %v5479_v31  ;;  %v1881_v62 = vcombine.high %v5477_v30, %v5477_v30 }
0x1e94   :  { %v936_v63 = vcombine.high %v5612_v23, %v5612_v23  ;;  %v1582_v23 = vcombine.high %v5654_v49, %v5654_v49 }
0x1e95   :  { %v2575_v2 = vrot.slane %v2567_v0, %v5479_v31  ;;  %v2578_v3 = vadd.f32 %v2571_v1, %v5729_v53  ;;  %v1259_v1 = vcombine.high %v5628_v38, %v5628_v38 }
0x1e96   :  { %v952_v0 = vrot.slane %v936_v63, %v5479_v31 }
0x1e97   :  { %v2579_v58 = vadd.f32 %v5727_v51, %v2575_v2  ;;  %5046 = vtanh.f32 %v2578_v3  ;;  %v1275_v3 = vrot.slane %v1259_v1, %v5479_v31 }
0x1e99   :  { %5048 = vtanh.f32 %v2579_v58  ;;  %v1598_v58 = vrot.slane %v1582_v23, %v5479_v31 }
0x1ea4   :  { %v5047_v5 = vpop.eup %5046 }
0x1ea5   :  { %4819 = vmatpush3.xpose.msk.msra.mxu1 %vm213_vm8, %v5047_v5 }
0x1ea6   :  { %4823 = vmatprep.subr.mxu1 %v5127_v17  ;;  %v5049_v33 = vpop.eup %5048 }
0x1ea8   :  { %4821 = vmatmul.mubr.msk.f32.vlgmr.msra.gmra.mxu1 %vm213_vm8, %v5747_v6 }
0x1ea9   :  { %4824 = vmatpush3.xpose.msk.msra.mxu1 %vm213_vm8, %v5049_v33  ;;  %4825 = vmatprep.mubr.msk.f32.mxu1 %vm5128_vm7, %v5127_v17 }
0x1eaa   :  { %4833 = vmatprep.subr.mxu1 %v5127_v17 }
0x1eac   :  { %4826 = vmatmul.mubr.msk.f32.vlgmr.msra.gmra.mxu1 %vm213_vm8, %v5747_v6 }
0x1ead   :  { %4834 = vmatpush3.msra.mxu1 %v5680_v34  ;;  %4835 = vmatprep.mubr.msk.f32.mxu1 %vm5128_vm7, %v5127_v17 }
0x1eae   :  { %4849 = vmatprep.subr.mxu1 %v5127_v17 }
0x1f02   :  { %v2099_v9 = vpop.permute.xlu1 %2098 }
0x1f03   :  { %4777 = vmatmul.mubr.msk.f32.vlgmr.msra.gmra.mxu0 %vm213_vm8, %v2099_v9 }
0x1f04   :  { %4798 = vmatprep.mubr.msk.f32.mxu0 %vm5128_vm7, %v5127_v17 }
0x1f68   :  { %v5765_v10 = vpop.f32.mrf.mxu1 }
0x1f6a   :  { %v4822_v13 = vpop.f32.mrf.mxu1 }
0x1f6c   :  { %v5767_v14 = vpop.f32.mrf.mxu1 }
0x1f6d   :  { %v2733_v7 = vrot.slane %v5767_v14, 7 }
0x1f6e   :  { %v4827_v16 = vpop.f32.mrf.mxu1 }
0x1f6f   :  { %v2734_v48 = vsel %vm2471_vm10, %v2733_v7, %v5765_v10 }
0x1f70   :  { %v2737_v56 = vsel %vm2736_vm11, %v2734_v48, -inf }
0x1fc3   :  { %v2168_v22 = vpop.f32.mrf.mxu0 }
0x1fc4   :  { %v2173_v24 = vrot.slane %v2168_v22, 4 }
0x1fc5   :  { %v4778_v26 = vpop.f32.mrf.mxu0 }
0x1fc6   :  { %v2175_v29 = vadd.f32 %v2173_v24, %v5289_v52  ;;  %v772_v52 = vcombine.high %v5505_v41, %v5505_v41  ;;  %v1581_v41 = vcombine.high %v5563_v59, %v5563_v59  ;;  %v1888_v59 = vrot.slane %v1881_v62, %v5469_v25 }
0x1fc8   :  { %5050 = vtanh.f32 %v2175_v29  ;;  %v785_v61 = vrot.slane %v772_v52, %v5479_v31  ;;  %v1594_v60 = vrot.slane %v1581_v41, %v5479_v31  ;;  %v4409_v36 = vmul.f32 -1.442695, %v2175_v29 }
0x1fc9   :  { %v1889_v2 = vcombine.high %v1888_v59, %v1888_v59  ;;  %v5809_v30 = vrot.slane %v1888_v59, %v5469_v25 }
0x1fca   :  { %5052 = vpow2.f32 %v4409_v36 }
0x1fcb   :  { %v1904_v38 = vcombine.high %v5809_v30, %v5809_v30  ;;  %v5819_v5 = vrot.slane %v1889_v2, %v5469_v25 }
0x1fcd   :  { %v1917_v33 = vrot.slane %v1904_v38, %v5479_v31  ;;  %v1905_v9 = vcombine.high %v5819_v5, %v5819_v5 }
0x1fcf   :  { %v1921_v49 = vrot.slane %v1905_v9, %v5479_v31 }
0x1fd5   :  { %v5051_v18 = vpop.eup %5050 }
0x1fd6   :  { %2188 = vrot.lane.b32.xlu0 %v5051_v18, %s5129_s2 }
0x1fd7   :  { %v5053_v13 = vpop.eup %5052 }
0x1fd8   :  { %v2179_v16 = vadd.f32 1.0, %v5053_v13  ;;  %v773_v13 = vcombine.high %v5604_v55, %v5604_v55 }
0x1fda   :  { %5054 = vrcp.f32 %v2179_v16  ;;  %v34_v16 = vld [vmem:[%s6278_s3 + $0x40] sm:$0xff]  ;;  %v789_v55 = vrot.slane %v773_v13, %v5479_v31 }
0x1fe7   :  { %v5828_v22 = vpop.eup %5054 }
0x1ff5   :  { %2738 = vmax.xlane.f32.xlu0 %v2737_v56 }
0x200b   :  { %470 = vrot.lane.b32.xlu0 %v461_v44, %s5130_s5 }
0x200f   :  { %794 = vrot.lane.b32.xlu0 %v785_v61, %s5130_s5 }
0x2013   :  { %957 = vrot.lane.b32.xlu0 %v948_v50, %s5130_s5 }
0x2017   :  { %1280 = vrot.lane.b32.xlu0 %v1271_v32, %s5130_s5  ;;  %v2184_v32 = vrot.slane %v5723_v37, 4 }
0x2019   :  { %v2186_v41 = vmul.f32 %v5828_v22, %v2184_v32 }
0x201b   :  { %1603 = vrot.lane.b32.xlu0 %v1594_v60, %s5130_s5 }
0x201f   :  { %636 = vrot.lane.b32.xlu0 %v629_v54, %s5130_s5 }
0x2023   :  { %959 = vrot.lane.b32.xlu0 %v952_v0, %s5130_s5 }
0x2027   :  { %1282 = vrot.lane.b32.xlu0 %v1275_v3, %s5130_s5 }
0x202b   :  { %1605 = vrot.lane.b32.xlu0 %v1598_v58, %s5130_s5  ;;  %v1095_v58 = vcombine.high %v5528_v47, %v5528_v47  ;;  %v36_v47 = vld [vmem:[%s6278_s3 + $0x50] sm:$0xff] }
0x202d   :  { %v1108_v38 = vrot.slane %v1095_v58, %v5479_v31 }
0x202f   :  { %1926 = vrot.lane.b32.xlu0 %v1917_v33, %s5130_s5  ;;  %v1418_v33 = vcombine.high %v5551_v57, %v5551_v57 }
0x2031   :  { %v1431_v9 = vrot.slane %v1418_v33, %v5479_v31 }
0x2033   :  { %1928 = vrot.lane.b32.xlu0 %v1921_v49, %s5130_s5  ;;  %v449_v49 = vcombine.high %v5588_v12, %v5588_v12  ;;  %v35_v12 = vld [vmem:[%s6278_s3 + $0x48] sm:$0xff] }
0x2035   :  { %v465_v57 = vrot.slane %v449_v49, %v5479_v31 }
0x2048   :  { %v2189_v24 = vpop.permute.xlu0 %2188 }
0x2049   :  { %v2191_v26 = vmul.f32 %v5828_v22, %v2189_v24  ;;  %v1725_v24 = vrot.slane %v5446_v4, %v5469_v25 }
0x204b   :  { %2193 = vrot.lane.b32.xlu1 %v2191_v26, %s5130_s5  ;;  %v1096_v26 = vcombine.high %v5620_v27, %v5620_v27  ;;  %v1726_v27 = vcombine.high %v1725_v24, %v1725_v24 }
0x204d   :  { %v1112_v4 = vrot.slane %v1096_v26, %v5479_v31 }
0x207e   :  { %v2739_v29 = vpop.xlane.xlu0 %2738 }
0x207f   :  { %v2741_v54 = vrot.slane %v2739_v29, 1  ;;  %v2744_v0 = vsub.f32 %v5765_v10, %v2739_v29  ;;  %v5897_v29 = vrot.slane %v1725_v24, %v5469_v25 }
0x2081   :  { %v2745_v63 = vsub.f32 %v5767_v14, %v2741_v54  ;;  %v2746_v1 = vmul.f32 1.442695, %v2744_v0  ;;  %v612_v14 = vcombine.high %v5500_v40, %v5500_v40  ;;  %v37_v40 = vld [vmem:[%s6278_s3 + $0x58] sm:$0xff] }
0x2082   :  { %v471_v18 = vpop.permute.xlu0 %470  ;;  %4791 = vmatpush3.msra.mxu0 %v37_v40 }
0x2083   :  { %481 = vst.msk [vmem:[#allocation2 + $0x20] sm:$0x1] %vm478_vm9, %v471_v18  ;;  %v2748_v59 = vmul.f32 1.442695, %v2745_v63  ;;  %v625_v10 = vrot.slane %v612_v14, %v5479_v31  ;;  %4792 = vmatprep.subr.mxu0 %v5127_v17  ;;  %v2048_v18 = vrot.slane %v5732_v43, %v5469_v25  ;;  %v5913_v43 = vrot.slane %v1726_v27, %v5469_v25 }
0x2084   :  { %4793 = vmatpush3.msra.mxu0 %v36_v47 }
0x2085   :  { %4794 = vmatprep.subr.mxu0 %v5127_v17 }
0x2086   :  { %v795_v7 = vpop.permute.xlu0 %794  ;;  %4795 = vmatpush3.msra.mxu0 %v35_v12 }
0x2087   :  { %804 = vst.msk [vmem:[#allocation2 + $0x22] sm:$0x1] %vm478_vm9, %v795_v7  ;;  %4796 = vmatprep.subr.mxu0 %v5127_v17  ;;  %v1419_v7 = vcombine.high %v5645_v11, %v5645_v11 }
0x2088   :  { %4797 = vmatpush3.msra.mxu0 %v34_v16 }
0x2089   :  { %4828 = vmatprep.subr.mxu0 %v5127_v17 }
0x208a   :  { %v958_v48 = vpop.permute.xlu0 %957 }
0x208b   :  { %967 = vst.msk [vmem:[#allocation2 + $0x23] sm:$0x1] %vm478_vm9, %v958_v48  ;;  %v5906_v48 = vrot.slane %v2048_v18, %v5469_v25 }
0x208d   :  { %v2064_v11 = vcombine.high %v5906_v48, %v5906_v48 }
0x208e   :  { %v1281_v56 = vpop.permute.xlu0 %1280 }
0x208f   :  { %1290 = vst.msk [vmem:[#allocation2 + $0x25] sm:$0x1] %vm478_vm9, %v1281_v56  ;;  %v1435_v56 = vrot.slane %v1419_v7, %v5479_v31 }
0x2092   :  { %v1604_v42 = vpop.permute.xlu0 %1603 }
0x2093   :  { %1613 = vst.msk [vmem:[#allocation2 + $0x27] sm:$0x1] %vm478_vm9, %v1604_v42  ;;  %v1741_v42 = vcombine.high %v5897_v29, %v5897_v29 }
0x2096   :  { %v637_v44 = vpop.permute.xlu0 %636 }
0x2097   :  { %645 = vst.msk [vmem:[#allocation2 + $0x31] sm:$0x1] %vm478_vm9, %v637_v44  ;;  %v2049_v44 = vcombine.high %v2048_v18, %v2048_v18 }
0x209a   :  { %v960_v52 = vpop.permute.xlu0 %959 }
0x209b   :  { %968 = vst.msk [vmem:[#allocation2 + $0x33] sm:$0x1] %vm478_vm9, %v960_v52  ;;  %v1754_v52 = vrot.slane %v1741_v42, %v5479_v31 }
0x209e   :  { %v1283_v61 = vpop.permute.xlu0 %1282 }
0x209f   :  { %1291 = vst.msk [vmem:[#allocation2 + $0x35] sm:$0x1] %vm478_vm9, %v1283_v61  ;;  %v5920_v61 = vrot.slane %v2049_v44, %v5469_v25 }
0x20a1   :  { %v2065_v32 = vcombine.high %v5920_v61, %v5920_v61 }
0x20a2   :  { %v1606_v19 = vpop.permute.xlu0 %1605 }
0x20a3   :  { %1614 = vst.msk [vmem:[#allocation2 + $0x37] sm:$0x1] %vm478_vm9, %v1606_v19  ;;  %v2077_v19 = vrot.slane %v2064_v11, %v5479_v31 }
0x20a6   :  { %v1927_v50 = vpop.permute.xlu0 %1926 }
0x20a7   :  { %1936 = vst.msk [vmem:[#allocation2 + $0x29] sm:$0x1] %vm478_vm9, %v1927_v50  ;;  %v1742_v50 = vcombine.high %v5913_v43, %v5913_v43 }
0x20aa   :  { %v1929_v20 = vpop.permute.xlu0 %1928 }
0x20ab   :  { %1937 = vst.msk [vmem:[#allocation2 + $0x39] sm:$0x1] %vm478_vm9, %v1929_v20  ;;  %v1758_v20 = vrot.slane %v1742_v50, %v5479_v31  ;;  %v5999_v50 = vld [vmem:[%s6278_s3 + $0x78] sm:$0xff] }
0x20bd   :  { %v2194_v60 = vpop.permute.xlu1 %2193 }
0x20be   :  { %v2196_v46 = vadd.f32 %v2194_v60, %v2186_v41  ;;  %v2081_v41 = vrot.slane %v2065_v32, %v5479_v31  ;;  %v6020_v32 = vld [vmem:[%s6278_s3 + $0x60] sm:$0xff] }
0x20c0   :  { %5056 = vtanh.f32 %v2196_v46 }
0x20c1   :  { %5058 = vpow2.f32 %v2748_v59 }
0x20c2   :  { %5060 = vpow2.f32 %v2746_v1 }
0x20cd   :  { %v5057_v62 = vpop.eup %5056 }
0x20ce   :  { %2199 = vrot.lane.b32.xlu1 %v5057_v62, %s5129_s2  ;;  %v5848_v36 = vpop.eup %5058 }
0x20cf   :  { %v2752_v37 = vrot.slane %v5848_v36, 7  ;;  %v5851_v2 = vpop.eup %5060 }
0x20d1   :  { %v2753_v3 = vsel %vm2471_vm10, %v2752_v37, %v5851_v2 }
0x20d2   :  { %v2755_v23 = vsel %vm2736_vm11, %v2753_v3, 0.0 }
0x20f2   :  { %2756 = vadd.xlane.f32.xlu1 %v2755_v23 }
0x2103   :  { %634 = vrot.lane.b32.xlu1 %v625_v10, %s5130_s5 }
0x2107   :  { %1117 = vrot.lane.b32.xlu1 %v1108_v38, %s5130_s5 }
0x210b   :  { %1440 = vrot.lane.b32.xlu1 %v1431_v9, %s5130_s5 }
0x210f   :  { %472 = vrot.lane.b32.xlu1 %v465_v57, %s5130_s5 }
0x2113   :  { %796 = vrot.lane.b32.xlu1 %v789_v55, %s5130_s5 }
0x2117   :  { %1119 = vrot.lane.b32.xlu1 %v1112_v4, %s5130_s5 }
0x211b   :  { %1442 = vrot.lane.b32.xlu1 %v1435_v56, %s5130_s5 }
0x211f   :  { %1763 = vrot.lane.b32.xlu1 %v1754_v52, %s5130_s5 }
0x2123   :  { %2086 = vrot.lane.b32.xlu1 %v2077_v19, %s5130_s5 }
0x2127   :  { %1765 = vrot.lane.b32.xlu1 %v1758_v20, %s5130_s5  ;;  %v6006_v20 = vld [vmem:[%s6278_s3 + $0x70] sm:$0xff] }
0x212b   :  { %2088 = vrot.lane.b32.xlu1 %v2081_v41, %s5130_s5 }
0x2140   :  { %v2200_v60 = vpop.permute.xlu1 %2199 }
0x2141   :  { %v2202_v46 = vmul.f32 %v5828_v22, %v2200_v60 }
0x2143   :  { %v2204_v62 = vcombine.high %v2202_v46, %v2202_v46 }
0x2145   :  { %v2211_v54 = vrot.slane %v2204_v62, %v5469_v25 }
0x2147   :  { %v2212_v63 = vcombine.high %v2211_v54, %v2211_v54  ;;  %v5935_v59 = vrot.slane %v2211_v54, %v5469_v25 }
0x2149   :  { %v5938_v0 = vrot.slane %v2212_v63, %v5469_v25  ;;  %v2227_v1 = vcombine.high %v5935_v59, %v5935_v59 }
0x214b   :  { %v2240_v37 = vrot.slane %v2227_v1, %v5479_v31  ;;  %v2228_v3 = vcombine.high %v5938_v0, %v5938_v0 }
0x214d   :  { %2249 = vrot.lane.b32.xlu0 %v2240_v37, %s5130_s5  ;;  %v2244_v22 = vrot.slane %v2228_v3, %v5479_v31 }
0x2151   :  { %2251 = vrot.lane.b32.xlu0 %v2244_v22, %s5130_s5 }
0x217b   :  { %v2757_v23 = vpop.xlane.xlu1 %2756 }
0x217c   :  { %v2759_v14 = vrot.slane %v2757_v23, 1 }
0x217e   :  { %5062 = vrcp.f32 %v2759_v14 }
0x217f   :  { %v635_v10 = vpop.permute.xlu1 %634  ;;  %5064 = vrcp.f32 %v2757_v23 }
0x2180   :  { %644 = vst.msk [vmem:[#allocation2 + $0x21] sm:$0x1] %vm478_vm9, %v635_v10 }
0x2183   :  { %v1118_v58 = vpop.permute.xlu1 %1117 }
0x2184   :  { %1127 = vst.msk [vmem:[#allocation2 + $0x24] sm:$0x1] %vm478_vm9, %v1118_v58 }
0x2187   :  { %v1441_v38 = vpop.permute.xlu1 %1440 }
0x2188   :  { %1450 = vst.msk [vmem:[#allocation2 + $0x26] sm:$0x1] %vm478_vm9, %v1441_v38 }
0x218b   :  { %v5063_v33 = vpop.eup %5062  ;;  %v473_v9 = vpop.permute.xlu1 %472 }
0x218c   :  { %482 = vst.msk [vmem:[#allocation2 + $0x30] sm:$0x1] %vm478_vm9, %v473_v9  ;;  %v2765_v49 = vmul.f32 %v5063_v33, %v5848_v36  ;;  %v5065_v11 = vpop.eup %5064 }
0x218d   :  { %v2763_v19 = vmul.f32 %v5065_v11, %v5851_v2  ;;  %v6012_v2 = vld [vmem:[%s6278_s3 + $0x68] sm:$0xff] }
0x218e   :  { %4836 = vmatmul.mubr.msk.f32.vlgmr.msra.gmra.mxu1 %vm2766_vm12, %v2765_v49 }
0x218f   :  { %v797_v40 = vpop.permute.xlu1 %796  ;;  %v5954_v47 = vld [vmem:[#allocation2 + $0x20] sm:$0xff]  ;;  %4853 = vmatprep.mubr.msk.f32.mxu1 %vm5128_vm7, %v5127_v17 }
0x2190   :  { %805 = vst.msk [vmem:[#allocation2 + $0x32] sm:$0x1] %vm478_vm9, %v797_v40  ;;  %v2369_v57 = vcombine.high %v5954_v47, %v5954_v47 }
0x2192   :  { %v2371_v13 = vcombine.low %v5954_v47, %v2369_v57 }
0x2193   :  { %v1120_v12 = vpop.permute.xlu1 %1119 }
0x2194   :  { %1128 = vst.msk [vmem:[#allocation2 + $0x34] sm:$0x1] %vm478_vm9, %v1120_v12  ;;  %4799 = vmatmul.mubr.msk.f32.vlgmr.msra.gmra.mxu0 %vm213_vm8, %v2371_v13 }
0x2195   :  { %4829 = vmatpush3.msra.mxu0 %v5578_v8  ;;  %4801 = vmatprep.mubr.msk.f32.mxu0 %vm5128_vm7, %v5127_v17 }
0x2196   :  { %4838 = vmatprep.subr.mxu0 %v5127_v17 }
0x2197   :  { %v1443_v36 = vpop.permute.xlu1 %1442 }
0x2198   :  { %1451 = vst.msk [vmem:[#allocation2 + $0x36] sm:$0x1] %vm478_vm9, %v1443_v36 }
0x219b   :  { %v1764_v16 = vpop.permute.xlu1 %1763 }
0x219c   :  { %1773 = vst.msk [vmem:[#allocation2 + $0x28] sm:$0x1] %vm478_vm9, %v1764_v16 }
0x219f   :  { %v2087_v24 = vpop.permute.xlu1 %2086  ;;  %v5977_v27 = vld [vmem:[#allocation2 + $0x30] sm:$0xff] }
0x21a0   :  { %2096 = vst.msk [vmem:[#allocation2 + $0x2a] sm:$0x1] %vm478_vm9, %v2087_v24  ;;  %v2370_v42 = vcombine.high %v5977_v27, %v5977_v27 }
0x21a3   :  { %v1766_v55 = vpop.permute.xlu1 %1765 }
0x21a4   :  { %1774 = vst.msk [vmem:[#allocation2 + $0x38] sm:$0x1] %vm478_vm9, %v1766_v55 }
0x21a7   :  { %v2089_v26 = vpop.permute.xlu1 %2088 }
0x21a8   :  { %2097 = vst.msk [vmem:[#allocation2 + $0x3a] sm:$0x1] %vm478_vm9, %v2089_v26 }
0x21bf   :  { %v2250_v18 = vpop.permute.xlu0 %2249 }
0x21c0   :  { %2259 = vst.msk [vmem:[#allocation2 + $0x2b] sm:$0x1] %vm478_vm9, %v2250_v18 }
0x21c3   :  { %v2252_v4 = vpop.permute.xlu0 %2251 }
0x21c4   :  { %2260 = vst.msk [vmem:[#allocation2 + $0x3b] sm:$0x1] %vm478_vm9, %v2252_v4 }
0x21c7   :  { %v5975_v7 = vld [vmem:[#allocation2 + $0x28] sm:$0xf] }
0x21c8   :  { %v2372_v56 = vcombine.low %v5975_v7, %v5977_v27 }
0x21ca   :  { %4802 = vmatmul.mubr.msk.f32.gmra.mxu0 %vm213_vm8, %v2372_v56 }
0x21cb   :  { %4804 = vmatprep.mubr.msk.f32.mxu0 %vm5128_vm7, %v5127_v17  ;;  %v5986_v44 = vld [vmem:[#allocation2 + $0x38] sm:$0xf] }
0x21cc   :  { %v2373_v52 = vcombine.low %v2370_v42, %v5986_v44 }
0x21ce   :  { %4805 = vmatmul.mubr.msk.f32.gmra.mxu0 %vm213_vm8, %v2373_v52 }
0x21cf   :  { %4830 = vmatprep.mubr.msk.f32.mxu0 %vm5128_vm7, %v5127_v17 }
0x21d2   :  { %4831 = vmatmul.mubr.msk.f32.vlgmr.msra.gmra.mxu0 %vm2766_vm12, %v2763_v19 }
0x21d3   :  { %4846 = vmatprep.mubr.msk.f32.mxu0 %vm5128_vm7, %v5127_v17  ;;  %4839 = vmatpush3.msra.mxu0 %v5999_v50 }
0x21d4   :  { %4840 = vmatprep.subr.mxu0 %v5127_v17 }
0x21d5   :  { %4841 = vmatpush3.msra.mxu0 %v6006_v20 }
0x21d6   :  { %4842 = vmatprep.subr.mxu0 %v5127_v17 }
0x21d7   :  { %4843 = vmatpush3.msra.mxu0 %v6012_v2 }
0x21d8   :  { %4844 = vmatprep.subr.mxu0 %v5127_v17 }
0x21d9   :  { %4845 = vmatpush3.msra.mxu0 %v6020_v32 }
0x21da   :  { %4856 = vmatprep.subr.mxu0 %v5127_v17 }
0x224e   :  { %v6024_v41 = vpop.f32.mrf.mxu1 }
0x224f   :  { %v2917_v3 = vrot.slane %v6024_v41, 7 }
0x2250   :  { %v4837_v60 = vpop.f32.mrf.mxu1 }
0x2254   :  { %v6026_v46 = vpop.f32.mrf.mxu0 }
0x2255   :  { %v6046_v57 = vcombine.high %v6026_v46, %v6026_v46 }
0x2256   :  { %v4800_v62 = vpop.f32.mrf.mxu0 }
0x228a   :  { %v6028_v54 = vpop.f32.mrf.mxu0 }
0x228b   :  { %v6050_v13 = vcombine.high %v6028_v54, %v6028_v54 }
0x228c   :  { %v4803_v63 = vpop.f32.mrf.mxu0 }
0x228e   :  { %v6030_v1 = vpop.f32.mrf.mxu0 }
0x228f   :  { %v6057_v55 = vcombine.high %v6030_v1, %v6030_v1 }
0x2290   :  { %v4806_v37 = vpop.f32.mrf.mxu0 }
0x2292   :  { %v6033_v22 = vpop.f32.mrf.mxu0 }
0x2293   :  { %v2918_v23 = vsel %vm2471_vm10, %v2917_v3, %v6033_v22 }
0x2294   :  { %v4832_v14 = vpop.f32.mrf.mxu0  ;;  %4847 = vmatmul.mubr.msk.f32.vlgmr.msra.gmra.mxu0 %vm213_vm8, %v2918_v23  ;;  %v6071_v23 = vld [vmem:[%s6278_s3 + $0x81] sm:$0x1] }
0x2295   :  { %4860 = vmatprep.mubr.msk.f32.mxu0 %vm5128_vm7, %v5127_v17  ;;  %v2914_v14 = vadd.f32 %v6024_v41, %v5713_v39 }
0x2354   :  { %v2987_v10 = vpop.f32.mrf.mxu0 }
0x2355   :  { %v2998_v58 = vrot.slane %v2987_v10, %v5469_v25  ;;  %v2913_v10 = vadd.f32 %v6033_v22, %v5711_v28 }
0x2356   :  { %v4848_v38 = vpop.f32.mrf.mxu0 }
0x2357   :  { %v2999_v33 = vcombine.high %v2998_v58, %v2998_v58  ;;  %v3006_v9 = vrot.slane %v2998_v58, %v5469_v25  ;;  %v3426_v58 = vrot.slane %v2914_v14, 7 }
0x2359   :  { %v3013_v49 = vrot.slane %v2999_v33, %v5469_v25  ;;  %v3017_v40 = vrot.slane %v3006_v9, %v5479_v31 }
0x235b   :  { %v3021_v12 = vrot.slane %v3013_v49, %v5479_v31  ;;  %v3024_v36 = vcombine.high %v3017_v40, %v3017_v40  ;;  %v3028_v16 = vadd.f32 %v3017_v40, %v6026_v46  ;;  %v3030_v24 = vadd.f32 %v3017_v40, %v6028_v54 }
0x235d   :  { %v3025_v26 = vcombine.high %v3021_v12, %v3021_v12  ;;  %v3029_v18 = vadd.f32 %v3024_v36, %v6046_v57  ;;  %v3031_v4 = vadd.f32 %v3021_v12, %v6050_v13  ;;  %5066 = vtanh.f32 %v3028_v16 }
0x235e   :  { %v3033_v42 = vadd.f32 %v3021_v12, %v6057_v55 }
0x235f   :  { %v3032_v56 = vadd.f32 %v3025_v26, %v6030_v1  ;;  %5068 = vtanh.f32 %v3029_v18 }
0x2360   :  { %5070 = vtanh.f32 %v3030_v24 }
0x2361   :  { %5072 = vtanh.f32 %v3031_v4 }
0x2362   :  { %5074 = vtanh.f32 %v3032_v56 }
0x2363   :  { %5076 = vtanh.f32 %v3033_v42 }
0x236a   :  { %v5067_v52 = vpop.eup %5066 }
0x236c   :  { %v5069_v11 = vpop.eup %5068 }
0x236d   :  { %v5071_v19 = vpop.eup %5070  ;;  %v3043_v62 = vcombine.low %v5067_v52, %v5069_v11 }
0x236e   :  { %v5073_v60 = vpop.eup %5072  ;;  %4850 = vmatpush3.xpose.msk.msra.mxu1 %vm213_vm8, %v5071_v19 }
0x236f   :  { %v5075_v63 = vpop.eup %5074  ;;  %4851 = vmatprep.subr.mxu1 %v5127_v17 }
0x2370   :  { %v5077_v37 = vpop.eup %5076  ;;  %v3124_v3 = vcombine.low %v5073_v60, %v5075_v63 }
0x2371   :  { %4857 = vmatpush3.xpose.msk.msra.mxu0 %vm213_vm8, %v5077_v37 }
0x2372   :  { %4852 = vmatpush3.xpose.msk.msra.mxu1 %vm213_vm8, %v3043_v62  ;;  %4858 = vmatprep.subr.mxu0 %v5127_v17 }
0x2373   :  { %4863 = vmatprep.subr.mxu1 %v5127_v17 }
0x2375   :  { %4859 = vmatpush3.xpose.msk.msra.mxu0 %vm213_vm8, %v3124_v3  ;;  %4854 = vmatmul.mubr.msk.f32.vlgmr.msra.gmra.mxu1 %vm213_vm8, %v6071_v23 }
0x2376   :  { %4864 = vmatpush3.msk.msra.mxu1 %vm3238_vm13, %v5975_v7  ;;  %4877 = vmatprep.subr.mxu0 %v5127_v17 }
0x2377   :  { %4865 = vmatprep.subr.mxu1 %v5127_v17  ;;  %4867 = vmatprep.mubr.msk.f32.mxu1 %vm5128_vm7, %v5127_v17 }
0x2378   :  { %4861 = vmatmul.mubr.msk.f32.vlgmr.msra.gmra.mxu0 %vm213_vm8, %v6071_v23  ;;  %4866 = vmatpush3.msra.mxu1 %v5954_v47 }
0x2379   :  { %4878 = vmatpush3.msra.mxu0 %v5678_v45  ;;  %4885 = vmatprep.mubr.msk.f32.mxu0 %vm5128_vm7, %v5127_v17  ;;  %v3427_v45 = vsel %vm2471_vm10, %v3426_v58, %v2913_v10 }
0x237a   :  { %4879 = vmatprep.subr.mxu0 %v5127_v17  ;;  %4870 = vmatprep.subr.mxu1 %v5127_v17 }
0x237b   :  { %4880 = vmatpush3.msra.mxu0 %v5689_v35 }
0x237c   :  { %4881 = vmatprep.subr.mxu0 %v5127_v17 }
0x237d   :  { %4882 = vmatpush3.msra.mxu0 %v5698_v15 }
0x237e   :  { %4883 = vmatprep.subr.mxu0 %v5127_v17 }
0x237f   :  { %4884 = vmatpush3.msra.mxu0 %v5705_v21 }
0x2380   :  { %4886 = vmatmul.mubr.msk.f32.vlgmr.msra.gmra.mxu0 %vm213_vm8, %v3427_v45  ;;  %4898 = vmatprep.subr.mxu0 %v5127_v17 }
0x2381   :  { %4899 = vmatpush3.msra.mxu0 %v5578_v8  ;;  %4900 = vmatprep.mubr.msk.f32.mxu0 %vm5128_vm7, %v5127_v17 }
0x2382   :  { %4908 = vmatprep.subr.mxu0 %v5127_v17 }
0x2435   :  { %v3117_v35 = vpop.f32.mrf.mxu1 }
0x2437   :  { %v4855_v28 = vpop.f32.mrf.mxu1 }
0x2438   :  { %v3195_v15 = vpop.f32.mrf.mxu0 }
0x2439   :  { %v3201_v39 = vrot.slane %v3195_v15, 7 }
0x243a   :  { %v4862_v38 = vpop.f32.mrf.mxu0 }
0x243b   :  { %v3202_v21 = vsel %vm2471_vm10, %v3201_v39, %v3117_v35 }
0x243c   :  { %v3205_v33 = vsel %vm3204_vm14, %v3202_v21, -inf }
0x243d   :  { %3206 = vmax.xlane.f32.xlu1 %v3205_v33 }
0x2440   :  { %v3496_v9 = vpop.f32.mrf.mxu0 }
0x2441   :  { %v3507_v52 = vrot.slane %v3496_v9, %v5469_v25 }
0x2442   :  { %v4887_v49 = vpop.f32.mrf.mxu0 }
0x2443   :  { %v3508_v11 = vcombine.high %v3507_v52, %v3507_v52  ;;  %v3515_v19 = vrot.slane %v3507_v52, %v5469_v25 }
0x2445   :  { %v3522_v60 = vrot.slane %v3508_v11, %v5469_v25  ;;  %v3526_v62 = vrot.slane %v3515_v19, %v5479_v31 }
0x2447   :  { %v3530_v3 = vrot.slane %v3522_v60, %v5479_v31  ;;  %v3533_v14 = vadd.f32 %v3526_v62, %v5729_v53 }
0x2449   :  { %v3534_v10 = vadd.f32 %v5727_v51, %v3530_v3 }
0x24c6   :  { %v3207_v40 = vpop.xlane.xlu1 %3206 }
0x24c7   :  { %v3209_v8 = vrot.slane %v3207_v40, 1  ;;  %v3212_v12 = vsub.f32 %v3117_v35, %v3207_v40 }
0x24c9   :  { %v3213_v36 = vsub.f32 %v3195_v15, %v3209_v8  ;;  %v3214_v16 = vmul.f32 1.442695, %v3212_v12 }
0x24cb   :  { %v3216_v24 = vmul.f32 1.442695, %v3213_v36 }
0x24cd   :  { %5078 = vpow2.f32 %v3216_v24 }
0x24ce   :  { %5080 = vpow2.f32 %v3214_v16 }
0x24da   :  { %v5079_v26 = vpop.eup %5078 }
0x24db   :  { %v3220_v18 = vrot.slane %v5079_v26, 7  ;;  %v5081_v4 = vpop.eup %5080 }
0x24dd   :  { %v3221_v56 = vsel %vm2471_vm10, %v3220_v18, %v5081_v4 }
0x24de   :  { %v3223_v42 = vsel %vm3204_vm14, %v3221_v56, 0.0 }
0x24df   :  { %3224 = vadd.xlane.f32.xlu0 %v3223_v42 }
0x2568   :  { %v3225_v63 = vpop.xlane.xlu0 %3224 }
0x2569   :  { %v3227_v37 = vrot.slane %v3225_v63, 1  ;;  %5082 = vrcp.f32 %v3225_v63 }
0x256b   :  { %5084 = vrcp.f32 %v3227_v37 }
0x256c   :  { %5086 = vtanh.f32 %v3533_v14 }
0x256d   :  { %5088 = vtanh.f32 %v3534_v10 }
0x2576   :  { %v5083_v58 = vpop.eup %5082 }
0x2577   :  { %v3231_v45 = vmul.f32 %v5083_v58, %v5081_v4 }
0x2578   :  { %v5085_v35 = vpop.eup %5084 }
0x2579   :  { %4868 = vmatmul.mubr.msk.f32.vlgmr.msra.gmra.mxu1 %vm3234_vm15, %v3231_v45  ;;  %v3233_v28 = vmul.f32 %v5085_v35, %v5079_v26  ;;  %v5087_v51 = vpop.eup %5086 }
0x257a   :  { %4871 = vmatpush3.msk.msra.mxu1 %vm3238_vm13, %v5986_v44  ;;  %4874 = vmatprep.mubr.msk.f32.mxu1 %vm5128_vm7, %v5127_v17  ;;  %v5089_v53 = vpop.eup %5088 }
0x257b   :  { %4872 = vmatprep.subr.mxu1 %v5127_v17 }
0x257c   :  { %4873 = vmatpush3.msra.mxu1 %v5977_v27 }
0x257d   :  { %4888 = vmatprep.subr.mxu1 %v5127_v17  ;;  %4875 = vmatmul.mubr.msk.f32.vlgmr.msra.gmra.mxu1 %vm3234_vm15, %v3233_v28 }
0x257e   :  { %4889 = vmatpush3.xpose.msk.msra.mxu1 %vm213_vm8, %v5087_v51  ;;  %4890 = vmatprep.mubr.msk.f32.mxu1 %vm5128_vm7, %v5127_v17 }
0x257f   :  { %4893 = vmatprep.subr.mxu1 %v5127_v17 }
0x2581   :  { %4891 = vmatmul.mubr.msk.f32.vlgmr.msra.gmra.mxu1 %vm213_vm8, %v5747_v6 }
0x2582   :  { %4894 = vmatpush3.xpose.msk.msra.mxu1 %vm213_vm8, %v5089_v53  ;;  %4895 = vmatprep.mubr.msk.f32.mxu1 %vm5128_vm7, %v5127_v17 }
0x2583   :  { %4903 = vmatprep.subr.mxu1 %v5127_v17 }
0x2585   :  { %4896 = vmatmul.mubr.msk.f32.vlgmr.msra.gmra.mxu1 %vm213_vm8, %v5747_v6 }
0x2586   :  { %4904 = vmatpush3.msra.mxu1 %v5680_v34  ;;  %4905 = vmatprep.mubr.msk.f32.mxu1 %vm5128_vm7, %v5127_v17 }
0x2587   :  { %4919 = vmatprep.subr.mxu1 %v5127_v17 }
0x2639   :  { %v3307_v15 = vpop.f32.mrf.mxu1 }
0x263a   :  { %v3386_v49 = vmul.f32 %v3307_v15, %v6033_v22  ;;  %v3407_v40 = vmul.f32 %v3307_v15, %v3307_v15 }
0x263b   :  { %v4869_v39 = vpop.f32.mrf.mxu1 }
0x263d   :  { %v3382_v38 = vpop.f32.mrf.mxu1 }
0x263e   :  { %v3387_v21 = vmul.f32 %v3382_v38, %v6024_v41  ;;  %v3408_v33 = vmul.f32 %v3382_v38, %v3382_v38 }
0x263f   :  { %v4876_v9 = vpop.f32.mrf.mxu1 }
0x2640   :  { %v3390_v8 = vrot.slane %v3387_v21, 7  ;;  %v3411_v12 = vrot.slane %v3408_v33, 7 }
0x2641   :  { %v3606_v6 = vpop.f32.mrf.mxu1 }
0x2642   :  { %v6146_v34 = vsel %vm2471_vm10, %v3390_v8, %v3386_v49  ;;  %v6149_v36 = vsel %vm2471_vm10, %v3411_v12, %v3407_v40 }
0x2643   :  { %v4892_v16 = vpop.f32.mrf.mxu1 }
0x2645   :  { %v3679_v24 = vpop.f32.mrf.mxu1 }
0x2646   :  { %v3685_v26 = vrot.slane %v3679_v24, 7 }
0x2647   :  { %v4897_v18 = vpop.f32.mrf.mxu1 }
0x2648   :  { %v3686_v4 = vsel %vm2471_vm10, %v3685_v26, %v3606_v6 }
0x2649   :  { %v3688_v56 = vsel %vm2736_vm11, %v3686_v4, -inf }
0x264a   :  { %3689 = vmax.xlane.f32.xlu0 %v3688_v56 }
0x26d3   :  { %v3690_v42 = vpop.xlane.xlu0 %3689 }
0x26d4   :  { %v3692_v52 = vrot.slane %v3690_v42, 1  ;;  %v3695_v11 = vsub.f32 %v3606_v6, %v3690_v42 }
0x26d6   :  { %v3696_v19 = vsub.f32 %v3679_v24, %v3692_v52  ;;  %v3697_v60 = vmul.f32 1.442695, %v3695_v11 }
0x26d8   :  { %v3699_v62 = vmul.f32 1.442695, %v3696_v19  ;;  %v3398_v19 = vmul.f32 %v6024_v41, %v6024_v41 }
0x26da   :  { %5090 = vpow2.f32 %v3699_v62 }
0x26db   :  { %5092 = vpow2.f32 %v3697_v60 }
0x26e7   :  { %v5091_v63 = vpop.eup %5090 }
0x26e8   :  { %v3703_v37 = vrot.slane %v5091_v63, 7  ;;  %v5093_v3 = vpop.eup %5092 }
0x26ea   :  { %v3704_v14 = vsel %vm2471_vm10, %v3703_v37, %v5093_v3 }
0x26eb   :  { %v3706_v10 = vsel %vm2736_vm11, %v3704_v14, 0.0  ;;  %v3401_v14 = vrot.slane %v3398_v19, 7 }
0x26ec   :  { %3707 = vadd.xlane.f32.xlu1 %v3706_v10 }
0x2775   :  { %v3708_v58 = vpop.xlane.xlu1 %3707 }
0x2776   :  { %v3710_v45 = vrot.slane %v3708_v58, 1  ;;  %5094 = vrcp.f32 %v3708_v58 }
0x2778   :  { %5096 = vrcp.f32 %v3710_v45 }
0x2783   :  { %v5095_v35 = vpop.eup %5094 }
0x2784   :  { %v3714_v28 = vmul.f32 %v5095_v35, %v5093_v3 }
0x2785   :  { %v5097_v51 = vpop.eup %5096 }
0x2786   :  { %4901 = vmatmul.mubr.msk.f32.vlgmr.msra.gmra.mxu0 %vm2766_vm12, %v3714_v28  ;;  %v3716_v53 = vmul.f32 %v5097_v51, %v5091_v63  ;;  %v3394_v28 = vsel %vm3393_vm0, %v6146_v34, 0.0  ;;  %v1746_v51 = vrot.slane %v5897_v29, %v5479_v31 }
0x2787   :  { %4909 = vmatpush3.msra.mxu0 %v5999_v50  ;;  %4916 = vmatprep.mubr.msk.f32.mxu0 %vm5128_vm7, %v5127_v17 }
0x2788   :  { %4906 = vmatmul.mubr.msk.f32.vlgmr.msra.gmra.mxu1 %vm2766_vm12, %v3716_v53  ;;  %4910 = vmatprep.subr.mxu0 %v5127_v17  ;;  %v1913_v53 = vrot.slane %v5819_v5, %v5479_v31 }
0x2789   :  { %4911 = vmatpush3.msra.mxu0 %v6006_v20  ;;  %4923 = vmatprep.mubr.msk.f32.mxu1 %vm5128_vm7, %v5127_v17 }
0x278a   :  { %4912 = vmatprep.subr.mxu0 %v5127_v17 }
0x278b   :  { %4913 = vmatpush3.msra.mxu0 %v6012_v2 }
0x278c   :  { %4914 = vmatprep.subr.mxu0 %v5127_v17 }
0x278d   :  { %4915 = vmatpush3.msra.mxu0 %v6020_v32 }
0x278e   :  { %4926 = vmatprep.subr.mxu0 %v5127_v17 }
0x2846   :  { %v6169_v50 = vpop.f32.mrf.mxu0 }
0x2847   :  { %v4334_v58 = vmul.f32 %v6169_v50, %v6169_v50 }
0x2848   :  { %v4902_v15 = vpop.f32.mrf.mxu0  ;;  %v6171_v39 = vpop.f32.mrf.mxu1 }
0x2849   :  { %v3865_v20 = vrot.slane %v6171_v39, 7  ;;  %v4335_v63 = vmul.f32 %v6171_v39, %v6171_v39  ;;  %v2073_v15 = vrot.slane %v5920_v61, %v5479_v31 }
0x284a   :  { %v4907_v38 = vpop.f32.mrf.mxu1 }
0x284b   :  { %v3866_v21 = vsel %vm2471_vm10, %v3865_v20, %v6169_v50  ;;  %v4338_v10 = vrot.slane %v4335_v63, 7  ;;  %v2236_v20 = vrot.slane %v5938_v0, %v5479_v31 }
0x284c   :  { %4917 = vmatmul.mubr.msk.f32.vlgmr.msra.gmra.mxu0 %vm213_vm8, %v3866_v21 }
0x284d   :  { %4930 = vmatprep.mubr.msk.f32.mxu0 %vm5128_vm7, %v5127_v17  ;;  %v4339_v45 = vsel %vm2471_vm10, %v4338_v10, %v4334_v58 }
0x284e   :  { %v4341_v35 = vsel %vm3393_vm0, %v4339_v45, 0.0 }
0x290c   :  { %v3935_v2 = vpop.f32.mrf.mxu0 }
0x290d   :  { %v3946_v32 = vrot.slane %v3935_v2, %v5469_v25 }
0x290e   :  { %v4918_v33 = vpop.f32.mrf.mxu0 }
0x290f   :  { %v3947_v9 = vcombine.high %v3946_v32, %v3946_v32  ;;  %v3954_v49 = vrot.slane %v3946_v32, %v5469_v25 }
0x2911   :  { %v3961_v40 = vrot.slane %v3947_v9, %v5469_v25  ;;  %v3965_v8 = vrot.slane %v3954_v49, %v5479_v31 }
0x2913   :  { %v3969_v12 = vrot.slane %v3961_v40, %v5479_v31  ;;  %v3972_v6 = vcombine.high %v3965_v8, %v3965_v8  ;;  %v3976_v16 = vadd.f32 %v3965_v8, %v6026_v46  ;;  %v3978_v24 = vadd.f32 %v3965_v8, %v6028_v54 }
0x2915   :  { %v3973_v26 = vcombine.high %v3969_v12, %v3969_v12  ;;  %v3977_v18 = vadd.f32 %v3972_v6, %v6046_v57  ;;  %v3979_v4 = vadd.f32 %v3969_v12, %v6050_v13  ;;  %5098 = vtanh.f32 %v3976_v16 }
0x2916   :  { %v3981_v42 = vadd.f32 %v3969_v12, %v6057_v55 }
0x2917   :  { %v3980_v56 = vadd.f32 %v3973_v26, %v6030_v1  ;;  %5100 = vtanh.f32 %v3977_v18  ;;  %v3414_v26 = vsel %vm3393_vm0, %v6149_v36, 0.0  ;;  %v1750_v18 = vrot.slane %v5913_v43, %v5479_v31 }
0x2918   :  { %5102 = vtanh.f32 %v3978_v24 }
0x2919   :  { %5104 = vtanh.f32 %v3979_v4  ;;  %v1909_v4 = vrot.slane %v5809_v30, %v5479_v31 }
0x291a   :  { %5106 = vtanh.f32 %v3980_v56  ;;  %v2069_v56 = vrot.slane %v5906_v48, %v5479_v31 }
0x291b   :  { %5108 = vtanh.f32 %v3981_v42 }
0x2922   :  { %v5099_v25 = vpop.eup %5098 }
0x2924   :  { %v5101_v52 = vpop.eup %5100 }
0x2925   :  { %v5103_v46 = vpop.eup %5102  ;;  %v3991_v54 = vcombine.low %v5099_v25, %v5101_v52 }
0x2926   :  { %v5105_v11 = vpop.eup %5104  ;;  %4920 = vmatpush3.xpose.msk.msra.mxu1 %vm213_vm8, %v5103_v46 }
0x2927   :  { %v5107_v57 = vpop.eup %5106  ;;  %4921 = vmatprep.subr.mxu1 %v5127_v17 }
0x2928   :  { %v5109_v13 = vpop.eup %5108  ;;  %v4069_v1 = vcombine.low %v5105_v11, %v5107_v57 }
0x2929   :  { %4927 = vmatpush3.xpose.msk.msra.mxu0 %vm213_vm8, %v5109_v13 }
0x292a   :  { %4922 = vmatpush3.xpose.msk.msra.mxu1 %vm213_vm8, %v3991_v54  ;;  %4928 = vmatprep.subr.mxu0 %v5127_v17 }
0x292b   :  { %4933 = vmatprep.subr.mxu1 %v5127_v17 }
0x292d   :  { %4929 = vmatpush3.xpose.msk.msra.mxu0 %vm213_vm8, %v4069_v1  ;;  %4924 = vmatmul.mubr.msk.f32.vlgmr.msra.gmra.mxu1 %vm213_vm8, %v6071_v23 }
0x292e   :  { %4934 = vmatpush3.msk.msra.mxu1 %vm3238_vm13, %v5975_v7  ;;  %4937 = vmatprep.mubr.msk.f32.mxu1 %vm5128_vm7, %v5127_v17  ;;  %v3397_v7 = vmul.f32 %v6033_v22, %v6033_v22 }
0x292f   :  { %4935 = vmatprep.subr.mxu1 %v5127_v17 }
0x2930   :  { %4931 = vmatmul.mubr.msk.f32.vlgmr.msra.gmra.mxu0 %vm213_vm8, %v6071_v23  ;;  %4936 = vmatpush3.msra.mxu1 %v5954_v47  ;;  %v3402_v41 = vsel %vm2471_vm10, %v3401_v14, %v3397_v7 }
0x2931   :  { %4940 = vmatprep.subr.mxu1 %v5127_v17  ;;  %v3404_v22 = vsel %vm3393_vm0, %v3402_v41, 0.0 }
0x29ed   :  { %v4062_v55 = vpop.f32.mrf.mxu1 }
0x29ef   :  { %v4925_v60 = vpop.f32.mrf.mxu1 }
0x29f0   :  { %v4140_v62 = vpop.f32.mrf.mxu0 }
0x29f1   :  { %v4146_v37 = vrot.slane %v4140_v62, 7 }
0x29f2   :  { %v4932_v3 = vpop.f32.mrf.mxu0 }
0x29f3   :  { %v4147_v23 = vsel %vm2471_vm10, %v4146_v37, %v4062_v55 }
0x29f4   :  { %v4149_v47 = vsel %vm3204_vm14, %v4147_v23, -inf }
0x29f5   :  { %4150 = vmax.xlane.f32.xlu0 %v4149_v47 }
0x29f9   :  { %3405 = vadd.xlane.f32.xlu0 %v3404_v22 }
0x29fd   :  { %4342 = vadd.xlane.f32.xlu0 %v4341_v35 }
0x2a01   :  { %3395 = vadd.xlane.f32.xlu0 %v3394_v28 }
0x2a17   :  { %1759 = vrot.lane.b32.xlu0 %v1746_v51, %s5130_s5 }
0x2a1b   :  { %1924 = vrot.lane.b32.xlu0 %v1913_v53, %s5130_s5 }
0x2a1f   :  { %2084 = vrot.lane.b32.xlu0 %v2073_v15, %s5130_s5 }
0x2a23   :  { %2247 = vrot.lane.b32.xlu0 %v2236_v20, %s5130_s5 }
0x2a7e   :  { %v4151_v34 = vpop.xlane.xlu0 %4150 }
0x2a7f   :  { %v4153_v38 = vrot.slane %v4151_v34, 1  ;;  %v4156_v29 = vsub.f32 %v4062_v55, %v4151_v34 }
0x2a81   :  { %v4157_v21 = vsub.f32 %v4140_v62, %v4153_v38  ;;  %v4158_v32 = vmul.f32 1.442695, %v4156_v29 }
0x2a82   :  { %v3406_v2 = vpop.xlane.xlu0 %3405 }
0x2a83   :  { %v4160_v33 = vmul.f32 1.442695, %v4157_v21  ;;  %v3417_v36 = vmax.f32 %v3406_v2, 1e-16 }
0x2a85   :  { %5110 = vpow2.f32 %v4160_v33 }
0x2a86   :  { %v6236_v5 = vpop.xlane.xlu0 %4342  ;;  %5112 = vpow2.f32 %v4158_v32 }
0x2a87   :  { %v4354_v58 = vmax.f32 %v6236_v5, 1e-16 }
0x2a8a   :  { %v6238_v9 = vpop.xlane.xlu0 %3395 }
0x2a8e   :  { %v1760_v61 = vpop.permute.xlu0 %1759 }
0x2a92   :  { %v5111_v49 = vpop.eup %5110  ;;  %v1925_v40 = vpop.permute.xlu0 %1924 }
0x2a93   :  { %v4164_v8 = vrot.slane %v5111_v49, 7  ;;  %v5113_v0 = vpop.eup %5112 }
0x2a95   :  { %v4165_v12 = vsel %vm2471_vm10, %v4164_v8, %v5113_v0 }
0x2a96   :  { %v2085_v6 = vpop.permute.xlu0 %2084  ;;  %v4167_v16 = vsel %vm3204_vm14, %v4165_v12, 0.0 }
0x2a97   :  { %4168 = vadd.xlane.f32.xlu1 %v4167_v16 }
0x2a9a   :  { %v2248_v24 = vpop.permute.xlu0 %2247 }
0x2a9b   :  { %3415 = vadd.xlane.f32.xlu1 %v3414_v26 }
0x2aac   :  { %1761 = vrot.lane.b32.xlu1 %v1750_v18, %s5130_s5 }
0x2ab0   :  { %1922 = vrot.lane.b32.xlu1 %v1909_v4, %s5130_s5 }
0x2ab4   :  { %2082 = vrot.lane.b32.xlu1 %v2069_v56, %s5130_s5 }
0x2b20   :  { %v4169_v42 = vpop.xlane.xlu1 %4168 }
0x2b21   :  { %v4171_v25 = vrot.slane %v4169_v42, 1  ;;  %5114 = vrcp.f32 %v4169_v42 }
0x2b23   :  { %5116 = vrcp.f32 %v4171_v25 }
0x2b24   :  { %v3416_v52 = vpop.xlane.xlu1 %3415  ;;  %5118 = vrsqrt.f32 %v3417_v36 }
0x2b25   :  { %v3419_v46 = vmax.f32 %v3416_v52, 1e-16 }
0x2b27   :  { %5120 = vrsqrt.f32 %v3419_v46 }
0x2b28   :  { %v1762_v43 = vpop.permute.xlu1 %1761  ;;  %5122 = vrsqrt.f32 %v4354_v58 }
0x2b2c   :  { %v1923_v11 = vpop.permute.xlu1 %1922 }
0x2b2e   :  { %v5115_v54 = vpop.eup %5114 }
0x2b2f   :  { %v4175_v30 = vmul.f32 %v5115_v54, %v5113_v0 }
0x2b30   :  { %v5117_v57 = vpop.eup %5116  ;;  %v2083_v13 = vpop.permute.xlu1 %2082 }
0x2b31   :  { %4938 = vmatmul.mubr.msk.f32.vlgmr.msra.gmra.mxu1 %vm3234_vm15, %v4175_v30  ;;  %v5119_v48 = vpop.eup %5118  ;;  %v4177_v1 = vmul.f32 %v5117_v57, %v5111_v49 }
0x2b32   :  { %4941 = vmatpush3.msk.msra.mxu1 %vm3238_vm13, %v5986_v44  ;;  %4944 = vmatprep.mubr.msk.f32.mxu1 %vm5128_vm7, %v5127_v17 }
0x2b33   :  { %4942 = vmatprep.subr.mxu1 %v5127_v17 }
0x2b34   :  { %v5121_v55 = vpop.eup %5120  ;;  %4943 = vmatpush3.msra.mxu1 %v5977_v27 }
0x2b35   :  { %4945 = vmatmul.mubr.msk.f32.vlgmr.msra.gmra.mxu1 %vm3234_vm15, %v4177_v1  ;;  %v3421_v19 = vmul.f32 %v5121_v55, %v5119_v48  ;;  %v5123_v28 = vpop.eup %5122 }
0x2b37   :  { %v3422_v15 = vmul.f32 %v3421_v19, %v6238_v9 }
0x2bf1   :  { %v4247_v60 = vpop.f32.mrf.mxu1 }
0x2bf2   :  { %v4344_v3 = vmul.f32 %v4247_v60, %v4247_v60  ;;  %v4324_v47 = vmul.f32 %v4247_v60, %v6169_v50 }
0x2bf3   :  { %v4939_v62 = vpop.f32.mrf.mxu1 }
0x2bf5   :  { %v4320_v7 = vpop.f32.mrf.mxu1 }
0x2bf6   :  { %v4325_v63 = vmul.f32 %v4320_v7, %v6171_v39  ;;  %v4345_v37 = vmul.f32 %v4320_v7, %v4320_v7  ;;  %v2232_v39 = vrot.slane %v5935_v59, %v5479_v31 }
0x2bf7   :  { %v4946_v44 = vpop.f32.mrf.mxu1 }
0x2bf8   :  { %v4328_v14 = vrot.slane %v4325_v63, 7  ;;  %v4348_v23 = vrot.slane %v4345_v37, 7 }
0x2bfa   :  { %v4349_v17 = vsel %vm2471_vm10, %v4348_v23, %v4344_v3  ;;  %v4329_v27 = vsel %vm2471_vm10, %v4328_v14, %v4324_v47 }
0x2bfb   :  { %v4351_v10 = vsel %vm3393_vm0, %v4349_v17, 0.0  ;;  %v4331_v41 = vsel %vm3393_vm0, %v4329_v27, 0.0 }
0x2bfc   :  { %4352 = vadd.xlane.f32.xlu1 %v4351_v10 }
0x2c00   :  { %4332 = vadd.xlane.f32.xlu1 %v4331_v41 }
0x2c11   :  { %2245 = vrot.lane.b32.xlu1 %v2232_v39, %s5130_s5 }
0x2c85   :  { %v4353_v22 = vpop.xlane.xlu1 %4352 }
0x2c86   :  { %v4356_v45 = vmax.f32 %v4353_v22, 1e-16 }
0x2c88   :  { %5124 = vrsqrt.f32 %v4356_v45 }
0x2c89   :  { %v4333_v50 = vpop.xlane.xlu1 %4332 }
0x2c8d   :  { %v2246_v35 = vpop.permute.xlu1 %2245 }
0x2c95   :  { %v5125_v51 = vpop.eup %5124 }
0x2c96   :  { %v4358_v53 = vmul.f32 %v5125_v51, %v5123_v28 }
0x2c98   :  { %v4359_v20 = vmul.f32 %v4358_v53, %v4333_v50 }
0x2c9a   :  { %v4360_v34 = vadd.f32 %v4359_v20, %v3422_v15 }
0x2c9c   :  { %v4361_v38 = vmul.f32 0.5, %v4360_v34 }
0x2c9e   :  { %4363 = vst.msk [vmem:[%s6279_s4] sm:$0x3] %vm4362_vm1, %v4361_v38 }

</bundles_post_ra>
